<compile_context>
chip_gen: v7x
topology: tpu7x:2x2x1
jax: 0.10.0
libtpu: 0.0.40
codegen_flags: <defaults>
</compile_context>

<pallas_src>
import functools

import numpy as np
import jax
import jax.numpy as jnp
from jax import lax
from jax.experimental import pallas as pl
from jax.experimental.pallas import tpu as pltpu


def compute_out_size(in_size, kernel, stride=1, padding=0):
    return (in_size + 2 * padding - kernel) // stride + 1


def prepare_scale_cnn_weights(conv_time_w, conv_space_w, n_chan, n_sample,
                              *, stride=3, pool=6, mxu_dtype=jnp.float32):
    """One-time host-side weight prep (hoisted out of the forward path).

    conv_time_w : (F, 1, 1, K)   nn.Conv2d(1, 10, (1, K), stride=(1,3)) weight
    conv_space_w: (Fo, F, C, 1)  nn.Conv2d(10, 10, (n_chan, 1)) weight
    Returns a dict holding the folded Toeplitz weight (C*S, pool*Npad) plus sizes.
    """
    wt = np.asarray(jax.device_get(conv_time_w), np.float32)    # (F, 1, 1, K)
    ws = np.asarray(jax.device_get(conv_space_w), np.float32)   # (Fo, F, C, 1)
    F, _, _, K = wt.shape
    Fo = ws.shape[0]
    C, S = n_chan, n_sample
    W1 = compute_out_size(S, K, stride=stride)
    W2 = compute_out_size(W1, pool, stride=pool)                # floor-mode pool
    n_out = Fo * W2                                             # flatten: co slow, w2 fast
    n_pad = ((n_out + 127) // 128) * 128                        # lane-dense output width

    # Fold the two bias-free convs: w_comb[c, k, co] = sum_ci ws[co, ci, c] * wt[ci, k]
    w_comb = np.einsum('oic,ik->cko', ws[..., 0], wt[:, 0, 0, :])   # (C, K, Fo)

    # Strided-Toeplitz expansion over time.  Lane n = j*n_pad + co*W2 + w2 holds the
    # pre-activation at output channel co and time index w = pool*w2 + j.
    big = np.zeros((C, S, pool * n_pad), np.float32)
    co_cols = np.arange(Fo) * W2
    for w2 in range(W2):
        for j in range(pool):
            s0 = stride * (pool * w2 + j)
            big[:, s0:s0 + K, j * n_pad + co_cols + w2] = w_comb
    w_big = jnp.asarray(big.reshape(C * S, pool * n_pad), dtype=mxu_dtype)

    return dict(w_big=w_big, n_out=n_out, n_pad=n_pad, pool=pool,
                n_chan=C, n_sample=S, mxu_dtype=mxu_dtype)


def _scale_cnn_kernel(x_ref, w_ref, o_ref, *, n_pad, pool, pool_step):
    """x_ref: (TB, C*S) f32   w_ref: (C*S, pool*n_pad) mxu_dtype   o_ref: (TB, n_pad) f32."""
    # In-kernel cast to the MXU dtype (VPU work, hidden under the matmul).
    x = x_ref[...].astype(w_ref.dtype)
    # conv_time + conv_space as lane-dense MXU matmuls, split into pool_step-wide
    # (pool_step*128-lane) N blocks with the max-pool folded in so the live
    # pre-pool intermediate stays small.
    m = None
    for j0 in range(0, pool, pool_step):
        nb = min(pool_step, pool - j0)
        part = jnp.dot(x, w_ref[:, j0 * n_pad:(j0 + nb) * n_pad],
                       preferred_element_type=jnp.float32)
        for jj in range(nb):
            blk = part[:, jj * n_pad:(jj + 1) * n_pad]
            m = blk if m is None else jnp.maximum(m, blk)
    # ELU(alpha=1), applied after pooling (monotonic -> commutes with max exactly).
    # exp(min(m,0))-1 keeps the lowering to a plain EUP exp; abs error vs expm1 ~1e-7.
    m = jnp.where(m > 0, m, jnp.exp(jnp.minimum(m, 0.0)) - 1.0)
    o_ref[...] = m.astype(o_ref.dtype)        # one unmasked full-tile store


def _choose_row_block(batch, mxu_dtype, *, target=256, min_grid_steps=2):
    """Batch tile: large enough to feed the MXU, clamped so tiny batches don't
    over-pad, and split so the grid has >=2 parallel steps when possible (v7x)."""
    g = 16 if jnp.dtype(mxu_dtype) == jnp.dtype(jnp.bfloat16) else 8   # sublane pack
    rup = lambda v: ((v + g - 1) // g) * g
    b_al = rup(batch)
    tb = min(target, b_al)
    if b_al > g and b_al // tb < min_grid_steps:
        tb = max(g, rup(-(-b_al // min_grid_steps)))
    return tb


def _build_scale_cnn_call(kernel, B_pad, TB, CS, N6, n_pad, w_bytes,
                          single_buffer_weight):
    w_kwargs = {}
    if single_buffer_weight:
        # Constant block index -> one VMEM copy of the folded weight is enough.
        w_kwargs["pipeline_mode"] = pl.Buffered(1)
    cost = pl.CostEstimate(
        flops=2 * B_pad * CS * N6,
        transcendentals=B_pad * n_pad,
        bytes_accessed=B_pad * CS * 4 + CS * N6 * w_bytes + B_pad * n_pad * 4)
    return pl.pallas_call(
        kernel,
        out_shape=jax.ShapeDtypeStruct((B_pad, n_pad), jnp.float32),
        grid=(B_pad // TB,),
        in_specs=[
            pl.BlockSpec((TB, CS), lambda i: (i, 0)),               # batch tile of x
            pl.BlockSpec((CS, N6), lambda i: (0, 0), **w_kwargs),   # folded weight
        ],
        out_specs=pl.BlockSpec((TB, n_pad), lambda i: (i, 0)),
        compiler_params=pltpu.CompilerParams(
            dimension_semantics=("parallel",),       # shard batch tiles across TCs
            vmem_limit_bytes=32 * 1024 * 1024),      # ample headroom even on v7x (64 MiB)
        cost_estimate=cost,
    )


def scale_cnn_forward(x, prep, *, row_block=None):
    """ScaleCNN forward.  x: (B, n_chan, n_sample) or (B, 1, n_chan, n_sample) f32."""
    if x.ndim == 4:                 # accept the module's NCHW input
        x = x[:, 0]
    B, C, S = x.shape
    assert (C, S) == (prep["n_chan"], prep["n_sample"])
    w_big = prep["w_big"]
    CS, N6 = w_big.shape
    n_pad, pool, n_out = prep["n_pad"], prep["pool"], prep["n_out"]

    TB = row_block if row_block is not None else _choose_row_block(B, prep["mxu_dtype"])
    B_pad = ((B + TB - 1) // TB) * TB
    x2 = x.reshape(B, CS)           # free contiguous reshape; cast happens in-kernel
    if B_pad != B:                  # only fires when TB does not divide B (< TB rows)
        x2 = jnp.pad(x2, ((0, B_pad - B), (0, 0)))

    kernel = functools.partial(_scale_cnn_kernel, n_pad=n_pad, pool=pool, pool_step=2)
    w_bytes = jnp.dtype(prep["mxu_dtype"]).itemsize
    try:
        out = _build_scale_cnn_call(kernel, B_pad, TB, CS, N6, n_pad, w_bytes,
                                    single_buffer_weight=True)(x2, w_big)
    except Exception:
        # pipeline_mode=pl.Buffered(1) unsupported on this jax version; fall back to
        # the default (double-buffered) weight spec — costs one extra VMEM copy of w_big.
        out = _build_scale_cnn_call(kernel, B_pad, TB, CS, N6, n_pad, w_bytes,
                                    single_buffer_weight=False)(x2, w_big)
    return out[:B, :n_out]


def scale_cnn_reference(x, conv_time_w, conv_space_w, *, stride=3, pool=6):
    """Pure-JAX reference mirroring the PyTorch module, for validation."""
    x4 = x[:, None, :, :]                                              # NCHW
    t = lax.conv_general_dilated(
        x4, conv_time_w, (1, stride), "VALID",
        dimension_numbers=("NCHW", "OIHW", "NCHW"),
        precision=lax.Precision.HIGHEST)
    s = lax.conv_general_dilated(
        t, conv_space_w, (1, 1), "VALID",
        dimension_numbers=("NCHW", "OIHW", "NCHW"),
        precision=lax.Precision.HIGHEST)
    s = jnp.where(s > 0, s, jnp.exp(jnp.minimum(s, 0.0)) - 1.0)        # ELU
    B, Co, H, W1 = s.shape
    W2 = W1 // pool
    p = s[..., :W2 * pool].reshape(B, Co, H, W2, pool).max(axis=-1)
    return p.reshape(B, -1)


if __name__ == "__main__":
    B, C, S, K = 2, 4, 128, 65   # batch, n_chan, n_sample, time_kernel (module default)
    key = jax.random.PRNGKey(0)
    k_x, k_t, k_s, k_x2 = jax.random.split(key, 4)
    x = jax.random.normal(k_x, (B, C, S), dtype=jnp.float32)
    conv_time_w = jax.random.normal(k_t, (10, 1, 1, K), dtype=jnp.float32) / jnp.sqrt(float(K))
    conv_space_w = jax.random.normal(k_s, (10, 10, C, 1), dtype=jnp.float32) / jnp.sqrt(10.0 * C)

    W2 = compute_out_size(compute_out_size(S, K, stride=3), 6, stride=6)
    n_out = 10 * W2

    ref = jax.block_until_ready(scale_cnn_reference(x, conv_time_w, conv_space_w))

    # f32 MXU path
    prep = prepare_scale_cnn_weights(conv_time_w, conv_space_w, n_chan=C, n_sample=S)
    out = jax.block_until_ready(scale_cnn_forward(x, prep))
    assert out.shape == (B, n_out), out.shape
    assert jnp.allclose(out, ref, atol=2e-3, rtol=2e-3), float(jnp.max(jnp.abs(out - ref)))

    # bf16 MXU path (worthwhile on v5e/v6e/v7x alike; expect ~1e-2..1e-1 abs error
    # from quantizing x and the folded weight; accumulation/pool/ELU stay f32).
    prep_bf16 = prepare_scale_cnn_weights(conv_time_w, conv_space_w, n_chan=C,
                                          n_sample=S, mxu_dtype=jnp.bfloat16)
    out_bf16 = jax.block_until_ready(scale_cnn_forward(x, prep_bf16))
    assert out_bf16.shape == (B, n_out), out_bf16.shape
    assert jnp.allclose(out_bf16, ref, atol=1e-1, rtol=1e-1), \
        float(jnp.max(jnp.abs(out_bf16 - ref)))

    # Larger batch: exercises the adaptive tile, >=2 parallel grid steps and tail pad.
    B2 = 20
    x_big = jax.random.normal(k_x2, (B2, C, S), dtype=jnp.float32)
    out_big = jax.block_until_ready(scale_cnn_forward(x_big, prep))
    ref_big = jax.block_until_ready(scale_cnn_reference(x_big, conv_time_w, conv_space_w))
    assert out_big.shape == (B2, n_out), out_big.shape
    assert jnp.allclose(out_big, ref_big, atol=2e-3, rtol=2e-3), \
        float(jnp.max(jnp.abs(out_big - ref_big)))

    print("KERNEL_OK")
</pallas_src>

<mosaic_0001>
module attributes {stable_mosaic.version = 11 : i64} {
  func.func @_scale_cnn_kernel(%arg0: i32, %arg1: memref<8x512xf32, #tpu.memory_space<vmem>>, %arg2: memref<512x768xf32, #tpu.memory_space<vmem>>, %arg3: memref<8x128xf32, #tpu.memory_space<vmem>>) attributes {dimension_semantics = [#tpu.dimension_semantics<parallel>], iteration_bounds = array<i64: 1>, scalar_prefetch = 0 : i64, scratch_operands = 0 : i64, tpu.core_type = #tpu.core_type<tc>, window_params = [{transform_indices = @transform_0, window_bounds = array<i64: 8, 512>}, {pipeline_mode = #tpu.pipeline_mode<synchronous>, transform_indices = @transform_1, window_bounds = array<i64: 512, 768>}, {transform_indices = @transform_2, window_bounds = array<i64: 8, 128>}]} {
    %c0 = arith.constant 0 : index
    %c0_0 = arith.constant 0 : index
    %0 = vector.load %arg1[%c0, %c0_0] : memref<8x512xf32, #tpu.memory_space<vmem>>, vector<8x512xf32>
    %c0_1 = arith.constant 0 : index
    %c0_2 = arith.constant 0 : index
    %1 = vector.load %arg2[%c0_1, %c0_2] : memref<512x768xf32, #tpu.memory_space<vmem>>, vector<512x256xf32>
    %cst = arith.constant dense<0.000000e+00> : vector<8x256xf32>
    %2 = tpu.matmul %0, %1, %cst {dimension_numbers = #tpu.dot_dimension_numbers<[1], [0], [0], [1], [0, 0, 1, 1], [], []>} : vector<8x512xf32>, vector<512x256xf32>, vector<8x256xf32> -> vector<8x256xf32>
    %3 = vector.extract_strided_slice %2 {offsets = [0, 0], sizes = [8, 128], strides = [1, 1]} : vector<8x256xf32> to vector<8x128xf32>
    %4 = vector.extract_strided_slice %2 {offsets = [0, 128], sizes = [8, 128], strides = [1, 1]} : vector<8x256xf32> to vector<8x128xf32>
    %5 = arith.maximumf %3, %4 : vector<8x128xf32>
    %c0_3 = arith.constant 0 : index
    %c256 = arith.constant 256 : index
    %6 = vector.load %arg2[%c0_3, %c256] : memref<512x768xf32, #tpu.memory_space<vmem>>, vector<512x256xf32>
    %cst_4 = arith.constant dense<0.000000e+00> : vector<8x256xf32>
    %7 = tpu.matmul %0, %6, %cst_4 {dimension_numbers = #tpu.dot_dimension_numbers<[1], [0], [0], [1], [0, 0, 1, 1], [], []>} : vector<8x512xf32>, vector<512x256xf32>, vector<8x256xf32> -> vector<8x256xf32>
    %8 = vector.extract_strided_slice %7 {offsets = [0, 0], sizes = [8, 128], strides = [1, 1]} : vector<8x256xf32> to vector<8x128xf32>
    %9 = arith.maximumf %5, %8 : vector<8x128xf32>
    %10 = vector.extract_strided_slice %7 {offsets = [0, 128], sizes = [8, 128], strides = [1, 1]} : vector<8x256xf32> to vector<8x128xf32>
    %11 = arith.maximumf %9, %10 : vector<8x128xf32>
    %c0_5 = arith.constant 0 : index
    %c512 = arith.constant 512 : index
    %12 = vector.load %arg2[%c0_5, %c512] : memref<512x768xf32, #tpu.memory_space<vmem>>, vector<512x256xf32>
    %cst_6 = arith.constant dense<0.000000e+00> : vector<8x256xf32>
    %13 = tpu.matmul %0, %12, %cst_6 {dimension_numbers = #tpu.dot_dimension_numbers<[1], [0], [0], [1], [0, 0, 1, 1], [], []>} : vector<8x512xf32>, vector<512x256xf32>, vector<8x256xf32> -> vector<8x256xf32>
    %14 = vector.extract_strided_slice %13 {offsets = [0, 0], sizes = [8, 128], strides = [1, 1]} : vector<8x256xf32> to vector<8x128xf32>
    %15 = arith.maximumf %11, %14 : vector<8x128xf32>
    %16 = vector.extract_strided_slice %13 {offsets = [0, 128], sizes = [8, 128], strides = [1, 1]} : vector<8x256xf32> to vector<8x128xf32>
    %17 = arith.maximumf %15, %16 : vector<8x128xf32>
    %cst_7 = arith.constant 0.000000e+00 : f32
    %18 = vector.broadcast %cst_7 : f32 to vector<8x128xf32>
    %19 = arith.cmpf ogt, %17, %18 : vector<8x128xf32>
    %cst_8 = arith.constant 0.000000e+00 : f32
    %20 = vector.broadcast %cst_8 : f32 to vector<8x128xf32>
    %21 = arith.minimumf %17, %20 : vector<8x128xf32>
    %22 = math.exp %21 : vector<8x128xf32>
    %cst_9 = arith.constant 1.000000e+00 : f32
    %23 = vector.broadcast %cst_9 : f32 to vector<8x128xf32>
    %24 = arith.subf %22, %23 : vector<8x128xf32>
    %25 = arith.select %19, %17, %24 : vector<8x128xi1>, vector<8x128xf32>
    %c0_10 = arith.constant 0 : index
    %c0_11 = arith.constant 0 : index
    %26 = vector.load %arg3[%c0_10, %c0_11] : memref<8x128xf32, #tpu.memory_space<vmem>>, vector<8x128xf32>
    tpu.vector_store %arg3[%c0_10, %c0_11], %25 {strides = array<i32>} : memref<8x128xf32, #tpu.memory_space<vmem>>, vector<8x128xf32>,
    return
  }
  func.func @transform_0(%arg0: i32) -> (i32, i32) {
    %c0_i32 = arith.constant 0 : i32
    %c0_i32_0 = arith.constant 0 : i32
    return %arg0, %c0_i32 : i32, i32
  }
  func.func @transform_1(%arg0: i32) -> (i32, i32) {
    %c0_i32 = arith.constant 0 : i32
    %c0_i32_0 = arith.constant 0 : i32
    %c0_i32_1 = arith.constant 0 : i32
    return %c0_i32, %c0_i32_0 : i32, i32
  }
  func.func @transform_2(%arg0: i32) -> (i32, i32) {
    %c0_i32 = arith.constant 0 : i32
    %c0_i32_0 = arith.constant 0 : i32
    return %arg0, %c0_i32 : i32, i32
  }
}

module attributes {stable_mosaic.version = 11 : i64} {
  func.func @_scale_cnn_kernel(%arg0: i32, %arg1: memref<8x512xf32, #tpu.memory_space<vmem>>, %arg2: memref<512x768xf32, #tpu.memory_space<vmem>>, %arg3: memref<8x128xf32, #tpu.memory_space<vmem>>) attributes {dimension_semantics = [#tpu.dimension_semantics<parallel>], iteration_bounds = array<i64: 1>, scalar_prefetch = 0 : i64, scratch_operands = 0 : i64, tpu.core_type = #tpu.core_type<tc>, window_params = [{transform_indices = @transform_0, window_bounds = array<i64: 8, 512>}, {pipeline_mode = #tpu.pipeline_mode<synchronous>, transform_indices = @transform_1, window_bounds = array<i64: 512, 768>}, {transform_indices = @transform_2, window_bounds = array<i64: 8, 128>}]} {
    %c0 = arith.constant 0 : index
    %c0_0 = arith.constant 0 : index
    %0 = vector.load %arg1[%c0, %c0_0] : memref<8x512xf32, #tpu.memory_space<vmem>>, vector<8x512xf32>
    %c0_1 = arith.constant 0 : index
    %c0_2 = arith.constant 0 : index
    %1 = vector.load %arg2[%c0_1, %c0_2] : memref<512x768xf32, #tpu.memory_space<vmem>>, vector<512x256xf32>
    %cst = arith.constant dense<0.000000e+00> : vector<8x256xf32>
    %2 = tpu.matmul %0, %1, %cst {dimension_numbers = #tpu.dot_dimension_numbers<[1], [0], [0], [1], [0, 0, 1, 1], [], []>} : vector<8x512xf32>, vector<512x256xf32>, vector<8x256xf32> -> vector<8x256xf32>
    %3 = vector.extract_strided_slice %2 {offsets = [0, 0], sizes = [8, 128], strides = [1, 1]} : vector<8x256xf32> to vector<8x128xf32>
    %4 = vector.extract_strided_slice %2 {offsets = [0, 128], sizes = [8, 128], strides = [1, 1]} : vector<8x256xf32> to vector<8x128xf32>
    %5 = arith.maximumf %3, %4 : vector<8x128xf32>
    %c0_3 = arith.constant 0 : index
    %c256 = arith.constant 256 : index
    %6 = vector.load %arg2[%c0_3, %c256] : memref<512x768xf32, #tpu.memory_space<vmem>>, vector<512x256xf32>
    %cst_4 = arith.constant dense<0.000000e+00> : vector<8x256xf32>
    %7 = tpu.matmul %0, %6, %cst_4 {dimension_numbers = #tpu.dot_dimension_numbers<[1], [0], [0], [1], [0, 0, 1, 1], [], []>} : vector<8x512xf32>, vector<512x256xf32>, vector<8x256xf32> -> vector<8x256xf32>
    %8 = vector.extract_strided_slice %7 {offsets = [0, 0], sizes = [8, 128], strides = [1, 1]} : vector<8x256xf32> to vector<8x128xf32>
    %9 = arith.maximumf %5, %8 : vector<8x128xf32>
    %10 = vector.extract_strided_slice %7 {offsets = [0, 128], sizes = [8, 128], strides = [1, 1]} : vector<8x256xf32> to vector<8x128xf32>
    %11 = arith.maximumf %9, %10 : vector<8x128xf32>
    %c0_5 = arith.constant 0 : index
    %c512 = arith.constant 512 : index
    %12 = vector.load %arg2[%c0_5, %c512] : memref<512x768xf32, #tpu.memory_space<vmem>>, vector<512x256xf32>
    %cst_6 = arith.constant dense<0.000000e+00> : vector<8x256xf32>
    %13 = tpu.matmul %0, %12, %cst_6 {dimension_numbers = #tpu.dot_dimension_numbers<[1], [0], [0], [1], [0, 0, 1, 1], [], []>} : vector<8x512xf32>, vector<512x256xf32>, vector<8x256xf32> -> vector<8x256xf32>
    %14 = vector.extract_strided_slice %13 {offsets = [0, 0], sizes = [8, 128], strides = [1, 1]} : vector<8x256xf32> to vector<8x128xf32>
    %15 = arith.maximumf %11, %14 : vector<8x128xf32>
    %16 = vector.extract_strided_slice %13 {offsets = [0, 128], sizes = [8, 128], strides = [1, 1]} : vector<8x256xf32> to vector<8x128xf32>
    %17 = arith.maximumf %15, %16 : vector<8x128xf32>
    %cst_7 = arith.constant 0.000000e+00 : f32
    %18 = vector.broadcast %cst_7 : f32 to vector<8x128xf32>
    %19 = arith.cmpf ogt, %17, %18 : vector<8x128xf32>
    %cst_8 = arith.constant 0.000000e+00 : f32
    %20 = vector.broadcast %cst_8 : f32 to vector<8x128xf32>
    %21 = arith.minimumf %17, %20 : vector<8x128xf32>
    %22 = math.exp %21 : vector<8x128xf32>
    %cst_9 = arith.constant 1.000000e+00 : f32
    %23 = vector.broadcast %cst_9 : f32 to vector<8x128xf32>
    %24 = arith.subf %22, %23 : vector<8x128xf32>
    %25 = arith.select %19, %17, %24 : vector<8x128xi1>, vector<8x128xf32>
    %c0_10 = arith.constant 0 : index
    %c0_11 = arith.constant 0 : index
    %26 = vector.load %arg3[%c0_10, %c0_11] : memref<8x128xf32, #tpu.memory_space<vmem>>, vector<8x128xf32>
    tpu.vector_store %arg3[%c0_10, %c0_11], %25 {strides = array<i32>} : memref<8x128xf32, #tpu.memory_space<vmem>>, vector<8x128xf32>,
    return
  }
  func.func @transform_0(%arg0: i32) -> (i32, i32) {
    %c0_i32 = arith.constant 0 : i32
    %c0_i32_0 = arith.constant 0 : i32
    return %arg0, %c0_i32 : i32, i32
  }
  func.func @transform_1(%arg0: i32) -> (i32, i32) {
    %c0_i32 = arith.constant 0 : i32
    %c0_i32_0 = arith.constant 0 : i32
    %c0_i32_1 = arith.constant 0 : i32
    return %c0_i32, %c0_i32_0 : i32, i32
  }
  func.func @transform_2(%arg0: i32) -> (i32, i32) {
    %c0_i32 = arith.constant 0 : i32
    %c0_i32_0 = arith.constant 0 : i32
    return %arg0, %c0_i32 : i32, i32
  }
}

</mosaic_0001>

<bundles_post_ra>
// kernel: tpu_custom_call.1
= control target key start
LH: loop header
LB: loop body
LE: loop exit
PB: predicated region body
PF: predicated region fallthrough
CT: control target
= control target key end

     0   :  { %7 = vsyncpa [#allocation3], 0  ;;  %s1433_s0 = inlined_call_operand.hbm [shape: f32[8,512], index: 0, kind: input, shape index: {}]   ;;  %s1434_s1 = inlined_call_operand.hbm [shape: f32[512,768], index: 1, kind: input, shape index: {}]   ;;  %s1435_s2 = inlined_call_operand.hbm [shape: f32[8,128], index: 2, kind: output, shape index: {}]  }
   0x1   :  { %8 = vsyncpa [#allocation6], 0 }
   0x2   :  { %9 = vsyncpa [#allocation4], 0  ;;  %s1350_s9 = smov [#allocation2]   ;;  %s1351_s11 = smov [#allocation5]  }
   0x3   :  { %s16_s10 = sshll.u32 %s1350_s9, 4  ;;  %s25_s12 = sshll.u32 %s1351_s11, 4  ;;  %s17_s10 = int_to_ptr.vmem [resolvable:$true] %s16_s10  ;;  %s1370_s12 = int_to_ptr.vmem [resolvable:$true] %s25_s12 }
   0x4   :  { %s1278_s15 = scalar_lea.hbm %s1433_s0, 512 }
   0x5   :  { %p1279_p0 = scmp.ne.s32.totalorder %s1433_s0, %s1278_s15  ;;  %p1282_p1 = scmp.lt.u32.totalorder %s1278_s15, %s1433_s0 }
   0x7   :  { %p1284_p2 = pnand %p1282_p1, %p1279_p0 }
   0x9   :  { %1287 = shalt.err (!%p1284_p2)
}
   0xa   :  { %s1288_s20 = scalar_lea.vmem %s17_s10, 512  ;;  %p1293_p4 = scmp.lt.s32.totalorder %s17_s10, %s17_s10 }
   0xb   :  { %p1289_p3 = scmp.ne.s32.totalorder %s17_s10, %s1288_s20  ;;  %p1294_p5 = scmp.lt.s32.totalorder %s1288_s20, %s1288_s20 }
   0xd   :  { %p1295_p6 = por %p1294_p5, %p1293_p4 }
   0xf   :  { %p1296_p7 = pnand %p1295_p6, %p1289_p3 }
  0x11   :  { %1299 = shalt.err (!%p1296_p7)
}
  0x12   :  { %19 = dma.hbm_to_vmem [thread:$0]  %s1433_s0, 512, %s17_s10, [#allocation3]  }
  0x13   :  { %s1300_s25 = scalar_lea.hbm %s1434_s1, 49152 }
  0x14   :  { %p1301_p8 = scmp.ne.s32.totalorder %s1434_s1, %s1300_s25  ;;  %p1304_p9 = scmp.lt.u32.totalorder %s1300_s25, %s1434_s1 }
  0x16   :  { %p1306_p10 = pnand %p1304_p9, %p1301_p8 }
  0x18   :  { %1309 = shalt.err (!%p1306_p10)
}
  0x19   :  { %s1310_s30 = scalar_lea.vmem %s1370_s12, 49152  ;;  %p1315_p12 = scmp.lt.s32.totalorder %s1370_s12, %s1370_s12 }
  0x1a   :  { %p1311_p11 = scmp.ne.s32.totalorder %s1370_s12, %s1310_s30  ;;  %p1316_p13 = scmp.lt.s32.totalorder %s1310_s30, %s1310_s30 }
  0x1c   :  { %p1317_p0 = por %p1316_p13, %p1315_p12 }
  0x1e   :  { %p1318_p1 = pnand %p1317_p0, %p1311_p11 }
  0x20   :  { %1321 = shalt.err (!%p1318_p1)
}
  0x21   :  { %s1352_s0 = smov 768   ;;  %s1353_s3 = smov 48  }
  0x22   :  { %31 = dma.hbm_to_vmem [thread:$0]  %s1434_s1, 49152, %s1370_s12, [#allocation6], %s1352_s0, %s1352_s0, %s1353_s3  }
  0x23   :  { %1344 = dma.done.wait [#allocation3], 512  }
  0x24   :  { %1345 = vsyncadd [#allocation3], 4294966784 }
  0x25   :  { %1346 = dma.done.wait [#allocation6], 49152  }
  0x26   :  { %1347 = vsyncadd [#allocation6], 4294918144  ;;  %v43_v0 = vld [vmem:[#allocation5 + $0x8] sm:$0xff]  ;;  %v45_v1 = vld [vmem:[#allocation5 + $0x38] sm:$0xff]  ;;  %s1354_s1 = smov [#allocation7]  }
  0x27   :  { %v107_v2 = vld [vmem:[#allocation5 + $0x608] sm:$0xff]  ;;  %v881_v3 = vpack.c.bf16 %v45_v1, %v43_v0  ;;  %v109_v4 = vld [vmem:[#allocation5 + $0x638] sm:$0xff]  ;;  %v42_v5 = vld [vmem:[#allocation5] sm:$0xff]  ;;  %s870_s6 = sshll.u32 %s1354_s1, 4  ;;  %s871_s6 = int_to_ptr.vmem [resolvable:$true] %s870_s6 }
  0x28   :  { %v44_v6 = vld [vmem:[#allocation5 + $0x30] sm:$0xff]  ;;  %v945_v7 = vpack.c.bf16 %v109_v4, %v107_v2  ;;  %v106_v9 = vld [vmem:[#allocation5 + $0x600] sm:$0xff]  ;;  %v47_v11 = vld [vmem:[#allocation5 + $0x68] sm:$0xff]  ;;  %s1322_s7 = scalar_lea.vmem %s871_s6, 128  ;;  %p1327_p3 = scmp.lt.s32.totalorder %s871_s6, %s871_s6 }
  0x29   :  { %v883_v8 = vpack.c.bf16 %v44_v6, %v42_v5  ;;  %v108_v10 = vld [vmem:[#allocation5 + $0x630] sm:$0xff]  ;;  %882 = vmatprep.subr.bf16.mxu1 %v881_v3  ;;  %v49_v13 = vld [vmem:[#allocation5 + $0x98] sm:$0xff]  ;;  %v111_v14 = vld [vmem:[#allocation5 + $0x668] sm:$0xff]  ;;  %p1323_p2 = scmp.ne.s32.totalorder %s871_s6, %s1322_s7  ;;  %p1328_p4 = scmp.lt.s32.totalorder %s1322_s7, %s1322_s7 }
  0x2a   :  { %v947_v12 = vpack.c.bf16 %v108_v10, %v106_v9  ;;  %v113_v15 = vld [vmem:[#allocation5 + $0x698] sm:$0xff]  ;;  %946 = vmatprep.subr.bf16.mxu0 %v945_v7  ;;  %v885_v16 = vpack.c.bf16 %v49_v13, %v47_v11  ;;  %v46_v18 = vld [vmem:[#allocation5 + $0x60] sm:$0xff]  ;;  %v48_v19 = vld [vmem:[#allocation5 + $0x90] sm:$0xff] }
  0x2b   :  { %884 = vmatpush1.bf16.msra.mxu1 %v883_v8  ;;  %v949_v17 = vpack.c.bf16 %v113_v15, %v111_v14  ;;  %v110_v20 = vld [vmem:[#allocation5 + $0x660] sm:$0xff]  ;;  %v887_v21 = vpack.c.bf16 %v48_v19, %v46_v18  ;;  %v112_v22 = vld [vmem:[#allocation5 + $0x690] sm:$0xff]  ;;  %v51_v23 = vld [vmem:[#allocation5 + $0xc8] sm:$0xff]  ;;  %p1329_p5 = por %p1328_p4, %p1327_p3 }
  0x2c   :  { %948 = vmatpush1.bf16.msra.mxu0 %v947_v12  ;;  %v53_v24 = vld [vmem:[#allocation5 + $0xf8] sm:$0xff]  ;;  %886 = vmatprep.subr.bf16.mxu1 %v885_v16  ;;  %v951_v25 = vpack.c.bf16 %v112_v22, %v110_v20  ;;  %v115_v27 = vld [vmem:[#allocation5 + $0x6c8] sm:$0xff]  ;;  %v50_v29 = vld [vmem:[#allocation5 + $0xc0] sm:$0xff] }
  0x2d   :  { %950 = vmatprep.subr.bf16.mxu0 %v949_v17  ;;  %v889_v26 = vpack.c.bf16 %v53_v24, %v51_v23  ;;  %v117_v28 = vld [vmem:[#allocation5 + $0x6f8] sm:$0xff]  ;;  %v52_v31 = vld [vmem:[#allocation5 + $0xf0] sm:$0xff]  ;;  %v114_v32 = vld [vmem:[#allocation5 + $0x6c0] sm:$0xff]  ;;  %p1330_p6 = pnand %p1329_p5, %p1323_p2 }
  0x2e   :  { %v953_v30 = vpack.c.bf16 %v117_v28, %v115_v27  ;;  %v116_v33 = vld [vmem:[#allocation5 + $0x6f0] sm:$0xff]  ;;  %v891_v34 = vpack.c.bf16 %v52_v31, %v50_v29  ;;  %v55_v35 = vld [vmem:[#allocation5 + $0x128] sm:$0xff]  ;;  %v57_v36 = vld [vmem:[#allocation5 + $0x158] sm:$0xff] }
  0x2f   :  { %888 = vmatpush1.bf16.msra.mxu1 %v887_v21  ;;  %v119_v37 = vld [vmem:[#allocation5 + $0x728] sm:$0xff]  ;;  %v955_v38 = vpack.c.bf16 %v116_v33, %v114_v32  ;;  %v893_v39 = vpack.c.bf16 %v57_v36, %v55_v35  ;;  %v121_v40 = vld [vmem:[#allocation5 + $0x758] sm:$0xff]  ;;  %v54_v41 = vld [vmem:[#allocation5 + $0x120] sm:$0xff] }
  0x30   :  { %952 = vmatpush1.bf16.msra.mxu0 %v951_v25  ;;  %890 = vmatprep.subr.bf16.mxu1 %v889_v26  ;;  %v56_v42 = vld [vmem:[#allocation5 + $0x150] sm:$0xff]  ;;  %v957_v43 = vpack.c.bf16 %v121_v40, %v119_v37  ;;  %v118_v44 = vld [vmem:[#allocation5 + $0x720] sm:$0xff]  ;;  %v59_v46 = vld [vmem:[#allocation5 + $0x188] sm:$0xff] }
  0x31   :  { %954 = vmatprep.subr.bf16.mxu0 %v953_v30  ;;  %v120_v45 = vld [vmem:[#allocation5 + $0x750] sm:$0xff]  ;;  %v61_v47 = vld [vmem:[#allocation5 + $0x1b8] sm:$0xff]  ;;  %v123_v48 = vld [vmem:[#allocation5 + $0x788] sm:$0xff]  ;;  %v895_v50 = vpack.c.bf16 %v56_v42, %v54_v41 }
  0x32   :  { %v125_v49 = vld [vmem:[#allocation5 + $0x7b8] sm:$0xff]  ;;  %v959_v51 = vpack.c.bf16 %v120_v45, %v118_v44  ;;  %v897_v52 = vpack.c.bf16 %v61_v47, %v59_v46  ;;  %v58_v53 = vld [vmem:[#allocation5 + $0x180] sm:$0xff]  ;;  %v60_v54 = vld [vmem:[#allocation5 + $0x1b0] sm:$0xff] }
  0x33   :  { %892 = vmatpush1.bf16.msra.mxu1 %v891_v34  ;;  %v122_v55 = vld [vmem:[#allocation5 + $0x780] sm:$0xff]  ;;  %v961_v56 = vpack.c.bf16 %v125_v49, %v123_v48  ;;  %v124_v57 = vld [vmem:[#allocation5 + $0x7b0] sm:$0xff]  ;;  %v63_v58 = vld [vmem:[#allocation5 + $0x1e8] sm:$0xff]  ;;  %v899_v62 = vpack.c.bf16 %v60_v54, %v58_v53 }
  0x34   :  { %956 = vmatpush1.bf16.msra.mxu0 %v955_v38  ;;  %894 = vmatprep.subr.bf16.mxu1 %v893_v39  ;;  %v65_v59 = vld [vmem:[#allocation5 + $0x218] sm:$0xff]  ;;  %v127_v60 = vld [vmem:[#allocation5 + $0x7e8] sm:$0xff]  ;;  %v963_v63 = vpack.c.bf16 %v124_v57, %v122_v55  ;;  %v62_v1 = vld [vmem:[#allocation5 + $0x1e0] sm:$0xff] }
  0x35   :  { %958 = vmatprep.subr.bf16.mxu0 %v957_v43  ;;  %v129_v61 = vld [vmem:[#allocation5 + $0x818] sm:$0xff]  ;;  %v901_v0 = vpack.c.bf16 %v65_v59, %v63_v58  ;;  %v64_v2 = vld [vmem:[#allocation5 + $0x210] sm:$0xff]  ;;  %v126_v3 = vld [vmem:[#allocation5 + $0x7e0] sm:$0xff] }
  0x36   :  { %v965_v4 = vpack.c.bf16 %v129_v61, %v127_v60  ;;  %v128_v5 = vld [vmem:[#allocation5 + $0x810] sm:$0xff]  ;;  %v67_v6 = vld [vmem:[#allocation5 + $0x248] sm:$0xff]  ;;  %v69_v7 = vld [vmem:[#allocation5 + $0x278] sm:$0xff]  ;;  %v903_v10 = vpack.c.bf16 %v64_v2, %v62_v1 }
  0x37   :  { %896 = vmatpush1.bf16.msra.mxu1 %v895_v50  ;;  %v131_v8 = vld [vmem:[#allocation5 + $0x848] sm:$0xff]  ;;  %v133_v9 = vld [vmem:[#allocation5 + $0x878] sm:$0xff]  ;;  %v967_v11 = vpack.c.bf16 %v128_v5, %v126_v3  ;;  %v905_v12 = vpack.c.bf16 %v69_v7, %v67_v6  ;;  %v66_v13 = vld [vmem:[#allocation5 + $0x240] sm:$0xff] }
  0x38   :  { %960 = vmatpush1.bf16.msra.mxu0 %v959_v51  ;;  %898 = vmatprep.subr.bf16.mxu1 %v897_v52  ;;  %v68_v14 = vld [vmem:[#allocation5 + $0x270] sm:$0xff]  ;;  %v130_v15 = vld [vmem:[#allocation5 + $0x840] sm:$0xff]  ;;  %v969_v16 = vpack.c.bf16 %v133_v9, %v131_v8  ;;  %v71_v18 = vld [vmem:[#allocation5 + $0x2a8] sm:$0xff] }
  0x39   :  { %962 = vmatprep.subr.bf16.mxu0 %v961_v56  ;;  %v132_v17 = vld [vmem:[#allocation5 + $0x870] sm:$0xff]  ;;  %v73_v19 = vld [vmem:[#allocation5 + $0x2d8] sm:$0xff]  ;;  %v135_v20 = vld [vmem:[#allocation5 + $0x8a8] sm:$0xff]  ;;  %v907_v22 = vpack.c.bf16 %v68_v14, %v66_v13 }
  0x3a   :  { %v137_v21 = vld [vmem:[#allocation5 + $0x8d8] sm:$0xff]  ;;  %v971_v23 = vpack.c.bf16 %v132_v17, %v130_v15  ;;  %v909_v24 = vpack.c.bf16 %v73_v19, %v71_v18  ;;  %v70_v25 = vld [vmem:[#allocation5 + $0x2a0] sm:$0xff]  ;;  %v72_v26 = vld [vmem:[#allocation5 + $0x2d0] sm:$0xff] }
  0x3b   :  { %900 = vmatpush1.bf16.msra.mxu1 %v899_v62  ;;  %v134_v27 = vld [vmem:[#allocation5 + $0x8a0] sm:$0xff]  ;;  %v973_v28 = vpack.c.bf16 %v137_v21, %v135_v20  ;;  %v136_v29 = vld [vmem:[#allocation5 + $0x8d0] sm:$0xff]  ;;  %v75_v30 = vld [vmem:[#allocation5 + $0x308] sm:$0xff]  ;;  %v911_v34 = vpack.c.bf16 %v72_v26, %v70_v25 }
  0x3c   :  { %964 = vmatpush1.bf16.msra.mxu0 %v963_v63  ;;  %902 = vmatprep.subr.bf16.mxu1 %v901_v0  ;;  %v77_v31 = vld [vmem:[#allocation5 + $0x338] sm:$0xff]  ;;  %v139_v32 = vld [vmem:[#allocation5 + $0x908] sm:$0xff]  ;;  %v975_v35 = vpack.c.bf16 %v136_v29, %v134_v27  ;;  %v74_v37 = vld [vmem:[#allocation5 + $0x300] sm:$0xff] }
  0x3d   :  { %966 = vmatprep.subr.bf16.mxu0 %v965_v4  ;;  %v141_v33 = vld [vmem:[#allocation5 + $0x938] sm:$0xff]  ;;  %v913_v36 = vpack.c.bf16 %v77_v31, %v75_v30  ;;  %v76_v38 = vld [vmem:[#allocation5 + $0x330] sm:$0xff]  ;;  %v138_v39 = vld [vmem:[#allocation5 + $0x900] sm:$0xff] }
  0x3e   :  { %v977_v40 = vpack.c.bf16 %v141_v33, %v139_v32  ;;  %v140_v41 = vld [vmem:[#allocation5 + $0x930] sm:$0xff]  ;;  %v79_v42 = vld [vmem:[#allocation5 + $0x368] sm:$0xff]  ;;  %v81_v43 = vld [vmem:[#allocation5 + $0x398] sm:$0xff]  ;;  %v915_v46 = vpack.c.bf16 %v76_v38, %v74_v37 }
  0x3f   :  { %904 = vmatpush1.bf16.msra.mxu1 %v903_v10  ;;  %v143_v44 = vld [vmem:[#allocation5 + $0x968] sm:$0xff]  ;;  %v145_v45 = vld [vmem:[#allocation5 + $0x998] sm:$0xff]  ;;  %v979_v47 = vpack.c.bf16 %v140_v41, %v138_v39  ;;  %v917_v48 = vpack.c.bf16 %v81_v43, %v79_v42  ;;  %v78_v49 = vld [vmem:[#allocation5 + $0x360] sm:$0xff] }
  0x40   :  { %968 = vmatpush1.bf16.msra.mxu0 %v967_v11  ;;  %906 = vmatprep.subr.bf16.mxu1 %v905_v12  ;;  %v80_v50 = vld [vmem:[#allocation5 + $0x390] sm:$0xff]  ;;  %v142_v51 = vld [vmem:[#allocation5 + $0x960] sm:$0xff]  ;;  %v981_v52 = vpack.c.bf16 %v145_v45, %v143_v44  ;;  %v83_v54 = vld [vmem:[#allocation5 + $0x3c8] sm:$0xff] }
  0x41   :  { %970 = vmatprep.subr.bf16.mxu0 %v969_v16  ;;  %v144_v53 = vld [vmem:[#allocation5 + $0x990] sm:$0xff]  ;;  %v85_v55 = vld [vmem:[#allocation5 + $0x3f8] sm:$0xff]  ;;  %v147_v56 = vld [vmem:[#allocation5 + $0x9c8] sm:$0xff]  ;;  %v919_v58 = vpack.c.bf16 %v80_v50, %v78_v49 }
  0x42   :  { %v149_v57 = vld [vmem:[#allocation5 + $0x9f8] sm:$0xff]  ;;  %v983_v59 = vpack.c.bf16 %v144_v53, %v142_v51  ;;  %v921_v60 = vpack.c.bf16 %v85_v55, %v83_v54  ;;  %v82_v61 = vld [vmem:[#allocation5 + $0x3c0] sm:$0xff]  ;;  %v84_v62 = vld [vmem:[#allocation5 + $0x3f0] sm:$0xff] }
  0x43   :  { %908 = vmatpush1.bf16.msra.mxu1 %v907_v22  ;;  %v146_v63 = vld [vmem:[#allocation5 + $0x9c0] sm:$0xff]  ;;  %v985_v0 = vpack.c.bf16 %v149_v57, %v147_v56  ;;  %v148_v1 = vld [vmem:[#allocation5 + $0x9f0] sm:$0xff]  ;;  %v87_v2 = vld [vmem:[#allocation5 + $0x428] sm:$0xff]  ;;  %v923_v6 = vpack.c.bf16 %v84_v62, %v82_v61 }
  0x44   :  { %972 = vmatpush1.bf16.msra.mxu0 %v971_v23  ;;  %910 = vmatprep.subr.bf16.mxu1 %v909_v24  ;;  %v89_v3 = vld [vmem:[#allocation5 + $0x458] sm:$0xff]  ;;  %v151_v4 = vld [vmem:[#allocation5 + $0xa28] sm:$0xff]  ;;  %v86_v7 = vld [vmem:[#allocation5 + $0x420] sm:$0xff]  ;;  %v987_v8 = vpack.c.bf16 %v148_v1, %v146_v63 }
  0x45   :  { %974 = vmatprep.subr.bf16.mxu0 %v973_v28  ;;  %v153_v5 = vld [vmem:[#allocation5 + $0xa58] sm:$0xff]  ;;  %v925_v9 = vpack.c.bf16 %v89_v3, %v87_v2  ;;  %v88_v10 = vld [vmem:[#allocation5 + $0x450] sm:$0xff]  ;;  %v150_v11 = vld [vmem:[#allocation5 + $0xa20] sm:$0xff] }
  0x46   :  { %v152_v12 = vld [vmem:[#allocation5 + $0xa50] sm:$0xff]  ;;  %v989_v13 = vpack.c.bf16 %v153_v5, %v151_v4  ;;  %v91_v14 = vld [vmem:[#allocation5 + $0x488] sm:$0xff]  ;;  %v93_v15 = vld [vmem:[#allocation5 + $0x4b8] sm:$0xff]  ;;  %v927_v20 = vpack.c.bf16 %v88_v10, %v86_v7 }
  0x47   :  { %912 = vmatpush1.bf16.msra.mxu1 %v911_v34  ;;  %v1401_v16 = vld [vmem:[#allocation2 + $0x8] sm:$0xff]  ;;  %v157_v18 = vld [vmem:[#allocation5 + $0xab8] sm:$0xff]  ;;  %v991_v21 = vpack.c.bf16 %v152_v12, %v150_v11  ;;  %v929_v22 = vpack.c.bf16 %v93_v15, %v91_v14  ;;  %v90_v23 = vld [vmem:[#allocation5 + $0x480] sm:$0xff] }
  0x48   :  { %976 = vmatpush1.bf16.msra.mxu0 %v975_v35  ;;  %914 = vmatprep.subr.bf16.mxu1 %v913_v36  ;;  %v155_v17 = vld [vmem:[#allocation5 + $0xa88] sm:$0xff]  ;;  %v1404_v19 = vld [vmem:[#allocation2 + $0x18] sm:$0xff]  ;;  %v92_v24 = vld [vmem:[#allocation5 + $0x4b0] sm:$0xff] }
  0x49   :  { %978 = vmatprep.subr.bf16.mxu0 %v977_v40  ;;  %234 = vmatprep.mubr.f32.mxu1 %v1401_v16  ;;  %v154_v25 = vld [vmem:[#allocation5 + $0xa80] sm:$0xff]  ;;  %v993_v26 = vpack.c.bf16 %v157_v18, %v155_v17  ;;  %v156_v27 = vld [vmem:[#allocation5 + $0xab0] sm:$0xff]  ;;  %v95_v28 = vld [vmem:[#allocation5 + $0x4e8] sm:$0xff]  ;;  %v931_v32 = vpack.c.bf16 %v92_v24, %v90_v23 }
  0x4a   :  { %305 = vmatprep.mubr.f32.mxu0 %v1404_v19  ;;  %v97_v29 = vld [vmem:[#allocation5 + $0x518] sm:$0xff]  ;;  %v159_v30 = vld [vmem:[#allocation5 + $0xae8] sm:$0xff]  ;;  %v995_v33 = vpack.c.bf16 %v156_v27, %v154_v25  ;;  %v94_v35 = vld [vmem:[#allocation5 + $0x4e0] sm:$0xff] }
  0x4b   :  { %916 = vmatpush1.bf16.msra.mxu1 %v915_v46  ;;  %v161_v31 = vld [vmem:[#allocation5 + $0xb18] sm:$0xff]  ;;  %v933_v34 = vpack.c.bf16 %v97_v29, %v95_v28  ;;  %v96_v36 = vld [vmem:[#allocation5 + $0x510] sm:$0xff]  ;;  %v158_v37 = vld [vmem:[#allocation5 + $0xae0] sm:$0xff] }
  0x4c   :  { %980 = vmatpush1.bf16.msra.mxu0 %v979_v47  ;;  %918 = vmatprep.subr.bf16.mxu1 %v917_v48  ;;  %v997_v38 = vpack.c.bf16 %v161_v31, %v159_v30  ;;  %v160_v39 = vld [vmem:[#allocation5 + $0xb10] sm:$0xff]  ;;  %v99_v40 = vld [vmem:[#allocation5 + $0x548] sm:$0xff]  ;;  %v101_v41 = vld [vmem:[#allocation5 + $0x578] sm:$0xff]  ;;  %v935_v44 = vpack.c.bf16 %v96_v36, %v94_v35 }
  0x4d   :  { %982 = vmatprep.subr.bf16.mxu0 %v981_v52  ;;  %v163_v42 = vld [vmem:[#allocation5 + $0xb48] sm:$0xff]  ;;  %v165_v43 = vld [vmem:[#allocation5 + $0xb78] sm:$0xff]  ;;  %v999_v45 = vpack.c.bf16 %v160_v39, %v158_v37  ;;  %v937_v46 = vpack.c.bf16 %v101_v41, %v99_v40  ;;  %v98_v47 = vld [vmem:[#allocation5 + $0x540] sm:$0xff] }
  0x4e   :  { %v100_v48 = vld [vmem:[#allocation5 + $0x570] sm:$0xff]  ;;  %v162_v49 = vld [vmem:[#allocation5 + $0xb40] sm:$0xff]  ;;  %v1001_v50 = vpack.c.bf16 %v165_v43, %v163_v42  ;;  %v103_v52 = vld [vmem:[#allocation5 + $0x5a8] sm:$0xff] }
  0x4f   :  { %920 = vmatpush1.bf16.msra.mxu1 %v919_v58  ;;  %v164_v51 = vld [vmem:[#allocation5 + $0xb70] sm:$0xff]  ;;  %v105_v53 = vld [vmem:[#allocation5 + $0x5d8] sm:$0xff]  ;;  %v167_v54 = vld [vmem:[#allocation5 + $0xba8] sm:$0xff]  ;;  %v939_v56 = vpack.c.bf16 %v100_v48, %v98_v47 }
  0x50   :  { %984 = vmatpush1.bf16.msra.mxu0 %v983_v59  ;;  %922 = vmatprep.subr.bf16.mxu1 %v921_v60  ;;  %v169_v55 = vld [vmem:[#allocation5 + $0xbd8] sm:$0xff]  ;;  %v1003_v57 = vpack.c.bf16 %v164_v51, %v162_v49  ;;  %v941_v58 = vpack.c.bf16 %v105_v53, %v103_v52  ;;  %v102_v59 = vld [vmem:[#allocation5 + $0x5a0] sm:$0xff]  ;;  %v104_v60 = vld [vmem:[#allocation5 + $0x5d0] sm:$0xff] }
  0x51   :  { %986 = vmatprep.subr.bf16.mxu0 %v985_v0  ;;  %v166_v61 = vld [vmem:[#allocation5 + $0xba0] sm:$0xff]  ;;  %v1005_v62 = vpack.c.bf16 %v169_v55, %v167_v54  ;;  %v168_v63 = vld [vmem:[#allocation5 + $0xbd0] sm:$0xff]  ;;  %v314_v0 = vld [vmem:[#allocation5 + $0x18] sm:$0xff]  ;;  %v943_v4 = vpack.c.bf16 %v104_v60, %v102_v59 }
  0x52   :  { %v316_v1 = vld [vmem:[#allocation5 + $0x48] sm:$0xff]  ;;  %v588_v3 = vld [vmem:[#allocation5 + $0x58] sm:$0xff]  ;;  %v1007_v5 = vpack.c.bf16 %v168_v63, %v166_v61  ;;  %v313_v7 = vld [vmem:[#allocation5 + $0x10] sm:$0xff] }
  0x53   :  { %924 = vmatpush1.bf16.msra.mxu1 %v923_v6  ;;  %v586_v2 = vld [vmem:[#allocation5 + $0x28] sm:$0xff]  ;;  %v1009_v6 = vpack.c.bf16 %v316_v1, %v314_v0  ;;  %v587_v11 = vld [vmem:[#allocation5 + $0x50] sm:$0xff]  ;;  %v318_v12 = vld [vmem:[#allocation5 + $0x78] sm:$0xff] }
  0x54   :  { %988 = vmatpush1.bf16.msra.mxu0 %v987_v8  ;;  %926 = vmatprep.subr.bf16.mxu1 %v925_v9  ;;  %v315_v8 = vld [vmem:[#allocation5 + $0x40] sm:$0xff]  ;;  %v1137_v10 = vpack.c.bf16 %v588_v3, %v586_v2  ;;  %v590_v14 = vld [vmem:[#allocation5 + $0x88] sm:$0xff]  ;;  %v592_v15 = vld [vmem:[#allocation5 + $0xb8] sm:$0xff] }
  0x55   :  { %990 = vmatprep.subr.bf16.mxu0 %v989_v13  ;;  %v585_v9 = vld [vmem:[#allocation5 + $0x20] sm:$0xff]  ;;  %v320_v13 = vld [vmem:[#allocation5 + $0xa8] sm:$0xff]  ;;  %v1409_v18 = vld [vmem:[#allocation2 + $0x10] sm:$0xff] }
  0x56   :  { %v1407_v17 = vld [vmem:[#allocation2] sm:$0xff]  ;;  %v317_v23 = vld [vmem:[#allocation5 + $0x70] sm:$0xff]  ;;  %v322_v28 = vld [vmem:[#allocation5 + $0xd8] sm:$0xff] }
  0x57   :  { %928 = vmatpush1.bf16.msra.mxu1 %v927_v20  ;;  %v1011_v20 = vpack.c.bf16 %v315_v8, %v313_v7  ;;  %v319_v24 = vld [vmem:[#allocation5 + $0xa0] sm:$0xff]  ;;  %v591_v27 = vld [vmem:[#allocation5 + $0xb0] sm:$0xff]  ;;  %v324_v29 = vld [vmem:[#allocation5 + $0x108] sm:$0xff] }
  0x58   :  { %992 = vmatpush1.bf16.msra.mxu0 %v991_v21  ;;  %930 = vmatprep.subr.bf16.mxu1 %v929_v22  ;;  %v1139_v21 = vpack.c.bf16 %v587_v11, %v585_v9  ;;  %v1013_v22 = vpack.c.bf16 %v320_v13, %v318_v12  ;;  %v589_v25 = vld [vmem:[#allocation5 + $0x80] sm:$0xff]  ;;  %v594_v30 = vld [vmem:[#allocation5 + $0xe8] sm:$0xff]  ;;  %v596_v31 = vld [vmem:[#allocation5 + $0x118] sm:$0xff] }
  0x59   :  { %994 = vmatprep.subr.bf16.mxu0 %v993_v26  ;;  %v1141_v26 = vpack.c.bf16 %v592_v15, %v590_v14  ;;  %v321_v35 = vld [vmem:[#allocation5 + $0xd0] sm:$0xff]  ;;  %v323_v36 = vld [vmem:[#allocation5 + $0x100] sm:$0xff]  ;;  %v326_v40 = vld [vmem:[#allocation5 + $0x138] sm:$0xff] }
  0x5a   :  { %v593_v37 = vld [vmem:[#allocation5 + $0xe0] sm:$0xff]  ;;  %v595_v39 = vld [vmem:[#allocation5 + $0x110] sm:$0xff]  ;;  %v328_v41 = vld [vmem:[#allocation5 + $0x168] sm:$0xff] }
  0x5b   :  { %932 = vmatpush1.bf16.msra.mxu1 %v931_v32  ;;  %v1015_v32 = vpack.c.bf16 %v319_v24, %v317_v23  ;;  %v598_v42 = vld [vmem:[#allocation5 + $0x148] sm:$0xff]  ;;  %v600_v43 = vld [vmem:[#allocation5 + $0x178] sm:$0xff]  ;;  %v325_v47 = vld [vmem:[#allocation5 + $0x130] sm:$0xff] }
  0x5c   :  { %996 = vmatpush1.bf16.msra.mxu0 %v995_v33  ;;  %934 = vmatprep.subr.bf16.mxu1 %v933_v34  ;;  %v1143_v33 = vpack.c.bf16 %v591_v27, %v589_v25  ;;  %v1017_v34 = vpack.c.bf16 %v324_v29, %v322_v28  ;;  %v327_v48 = vld [vmem:[#allocation5 + $0x160] sm:$0xff]  ;;  %v599_v51 = vld [vmem:[#allocation5 + $0x170] sm:$0xff]  ;;  %v330_v52 = vld [vmem:[#allocation5 + $0x198] sm:$0xff] }
  0x5d   :  { %998 = vmatprep.subr.bf16.mxu0 %v997_v38  ;;  %v1145_v38 = vpack.c.bf16 %v596_v31, %v594_v30  ;;  %v597_v49 = vld [vmem:[#allocation5 + $0x140] sm:$0xff]  ;;  %v332_v53 = vld [vmem:[#allocation5 + $0x1c8] sm:$0xff]  ;;  %v604_v55 = vld [vmem:[#allocation5 + $0x1d8] sm:$0xff] }
  0x5e   :  { %v602_v54 = vld [vmem:[#allocation5 + $0x1a8] sm:$0xff]  ;;  %v331_v59 = vld [vmem:[#allocation5 + $0x1c0] sm:$0xff]  ;;  %v334_v63 = vld [vmem:[#allocation5 + $0x1f8] sm:$0xff] }
  0x5f   :  { %936 = vmatpush1.bf16.msra.mxu1 %v935_v44  ;;  %v1019_v44 = vpack.c.bf16 %v323_v36, %v321_v35  ;;  %v601_v60 = vld [vmem:[#allocation5 + $0x1a0] sm:$0xff]  ;;  %v1153_v61 = vpack.c.bf16 %v604_v55, %v602_v54  ;;  %v336_v0 = vld [vmem:[#allocation5 + $0x228] sm:$0xff]  ;;  %v608_v2 = vld [vmem:[#allocation5 + $0x238] sm:$0xff] }
  0x60   :  { %1000 = vmatpush1.bf16.msra.mxu0 %v999_v45  ;;  %938 = vmatprep.subr.bf16.mxu1 %v937_v46  ;;  %v1147_v45 = vpack.c.bf16 %v595_v39, %v593_v37  ;;  %v1021_v46 = vpack.c.bf16 %v328_v41, %v326_v40  ;;  %v606_v1 = vld [vmem:[#allocation5 + $0x208] sm:$0xff]  ;;  %v335_v7 = vld [vmem:[#allocation5 + $0x220] sm:$0xff]  ;;  %v338_v11 = vld [vmem:[#allocation5 + $0x258] sm:$0xff] }
  0x61   :  { %1002 = vmatprep.subr.bf16.mxu0 %v1001_v50  ;;  %v1149_v50 = vpack.c.bf16 %v600_v43, %v598_v42  ;;  %v605_v8 = vld [vmem:[#allocation5 + $0x200] sm:$0xff]  ;;  %v1157_v9 = vpack.c.bf16 %v608_v2, %v606_v1  ;;  %v340_v12 = vld [vmem:[#allocation5 + $0x288] sm:$0xff]  ;;  %v612_v14 = vld [vmem:[#allocation5 + $0x298] sm:$0xff] }
  0x62   :  { %v610_v13 = vld [vmem:[#allocation5 + $0x268] sm:$0xff]  ;;  %v339_v23 = vld [vmem:[#allocation5 + $0x280] sm:$0xff]  ;;  %v342_v27 = vld [vmem:[#allocation5 + $0x2b8] sm:$0xff] }
  0x63   :  { %940 = vmatpush1.bf16.msra.mxu1 %v939_v56  ;;  %v1023_v56 = vpack.c.bf16 %v327_v48, %v325_v47  ;;  %v609_v24 = vld [vmem:[#allocation5 + $0x260] sm:$0xff]  ;;  %v1161_v25 = vpack.c.bf16 %v612_v14, %v610_v13  ;;  %v344_v28 = vld [vmem:[#allocation5 + $0x2e8] sm:$0xff]  ;;  %v616_v30 = vld [vmem:[#allocation5 + $0x2f8] sm:$0xff] }
  0x64   :  { %1004 = vmatpush1.bf16.msra.mxu0 %v1003_v57  ;;  %942 = vmatprep.subr.bf16.mxu1 %v941_v58  ;;  %v1025_v57 = vpack.c.bf16 %v332_v53, %v330_v52  ;;  %v329_v58 = vld [vmem:[#allocation5 + $0x190] sm:$0xff]  ;;  %v614_v29 = vld [vmem:[#allocation5 + $0x2c8] sm:$0xff]  ;;  %v343_v35 = vld [vmem:[#allocation5 + $0x2e0] sm:$0xff] }
  0x65   :  { %1006 = vmatprep.subr.bf16.mxu0 %v1005_v62  ;;  %v603_v62 = vld [vmem:[#allocation5 + $0x1d0] sm:$0xff]  ;;  %v1027_v3 = vpack.c.bf16 %v331_v59, %v329_v58  ;;  %v613_v36 = vld [vmem:[#allocation5 + $0x2c0] sm:$0xff]  ;;  %v1165_v37 = vpack.c.bf16 %v616_v30, %v614_v29  ;;  %v346_v39 = vld [vmem:[#allocation5 + $0x318] sm:$0xff] }
  0x66   :  { %v348_v40 = vld [vmem:[#allocation5 + $0x348] sm:$0xff]  ;;  %v620_v42 = vld [vmem:[#allocation5 + $0x358] sm:$0xff]  ;;  %v347_v47 = vld [vmem:[#allocation5 + $0x340] sm:$0xff] }
  0x67   :  { %944 = vmatpush1.bf16.msra.mxu1 %v943_v4  ;;  %v1155_v4 = vpack.c.bf16 %v603_v62, %v601_v60  ;;  %v618_v41 = vld [vmem:[#allocation5 + $0x328] sm:$0xff]  ;;  %v617_v48 = vld [vmem:[#allocation5 + $0x320] sm:$0xff]  ;;  %v624_v54 = vld [vmem:[#allocation5 + $0x3b8] sm:$0xff] }
  0x68   :  { %1008 = vmatpush1.bf16.msra.mxu0 %v1007_v5  ;;  %1010 = vmatprep.subr.bf16.mxu1 %v1009_v6  ;;  %v1029_v5 = vpack.c.bf16 %v336_v0, %v334_v63  ;;  %v333_v6 = vld [vmem:[#allocation5 + $0x1f0] sm:$0xff]  ;;  %v352_v52 = vld [vmem:[#allocation5 + $0x3a8] sm:$0xff]  ;;  %v351_v58 = vld [vmem:[#allocation5 + $0x3a0] sm:$0xff] }
  0x69   :  { %1138 = vmatprep.subr.bf16.mxu0 %v1137_v10  ;;  %v607_v10 = vld [vmem:[#allocation5 + $0x230] sm:$0xff]  ;;  %v1031_v15 = vpack.c.bf16 %v335_v7, %v333_v6  ;;  %v622_v53 = vld [vmem:[#allocation5 + $0x388] sm:$0xff]  ;;  %v621_v59 = vld [vmem:[#allocation5 + $0x380] sm:$0xff] }
  0x6a   :  { %235 = vmatmul.mubr.f32.vlgmr.msra.gmra.mrb[0].mxu1 %v1407_v17  ;;  %v1173_v60 = vpack.c.bf16 %v624_v54, %v622_v53  ;;  %v354_v62 = vld [vmem:[#allocation5 + $0x3d8] sm:$0xff]  ;;  %v356_v63 = vld [vmem:[#allocation5 + $0x408] sm:$0xff]  ;;  %v355_v6 = vld [vmem:[#allocation5 + $0x400] sm:$0xff] }
  0x6b   :  { %306 = vmatmul.mubr.f32.vlgmr.msra.gmra.mrb[0].mxu0 %v1409_v18  ;;  %1012 = vmatpush1.bf16.msra.mxu1 %v1011_v20  ;;  %v1159_v20 = vpack.c.bf16 %v607_v10, %v605_v8  ;;  %v626_v0 = vld [vmem:[#allocation5 + $0x3e8] sm:$0xff]  ;;  %v628_v1 = vld [vmem:[#allocation5 + $0x418] sm:$0xff]  ;;  %v625_v7 = vld [vmem:[#allocation5 + $0x3e0] sm:$0xff] }
  0x6c   :  { %1140 = vmatpush1.bf16.msra.mxu0 %v1139_v21  ;;  %1014 = vmatprep.subr.bf16.mxu1 %v1013_v22  ;;  %v1033_v21 = vpack.c.bf16 %v340_v12, %v338_v11  ;;  %v337_v22 = vld [vmem:[#allocation5 + $0x250] sm:$0xff]  ;;  %v1177_v8 = vpack.c.bf16 %v628_v1, %v626_v0  ;;  %v358_v10 = vld [vmem:[#allocation5 + $0x438] sm:$0xff]  ;;  %v360_v11 = vld [vmem:[#allocation5 + $0x468] sm:$0xff] }
  0x6d   :  { %1142 = vmatprep.subr.bf16.mxu0 %v1141_v26  ;;  %505 = vmatprep.mubr.f32.mxu1 %v1401_v16  ;;  %v611_v26 = vld [vmem:[#allocation5 + $0x290] sm:$0xff]  ;;  %v1035_v31 = vpack.c.bf16 %v339_v23, %v337_v22  ;;  %v630_v12 = vld [vmem:[#allocation5 + $0x448] sm:$0xff]  ;;  %v632_v13 = vld [vmem:[#allocation5 + $0x478] sm:$0xff] }
  0x6e   :  { %777 = vmatprep.mubr.f32.mxu0 %v1401_v16  ;;  %v1151_v16 = vpack.c.bf16 %v599_v51, %v597_v49  ;;  %v1169_v49 = vpack.c.bf16 %v620_v42, %v618_v41  ;;  %v350_v51 = vld [vmem:[#allocation5 + $0x378] sm:$0xff]  ;;  %v359_v22 = vld [vmem:[#allocation5 + $0x460] sm:$0xff] }
  0x6f   :  { %1016 = vmatpush1.bf16.msra.mxu1 %v1015_v32  ;;  %v1163_v32 = vpack.c.bf16 %v611_v26, %v609_v24  ;;  %v629_v23 = vld [vmem:[#allocation5 + $0x440] sm:$0xff]  ;;  %v1181_v24 = vpack.c.bf16 %v632_v13, %v630_v12  ;;  %v362_v26 = vld [vmem:[#allocation5 + $0x498] sm:$0xff] }
  0x70   :  { %1144 = vmatpush1.bf16.msra.mxu0 %v1143_v33  ;;  %1018 = vmatprep.subr.bf16.mxu1 %v1017_v34  ;;  %v1037_v33 = vpack.c.bf16 %v344_v28, %v342_v27  ;;  %v341_v34 = vld [vmem:[#allocation5 + $0x2b0] sm:$0xff]  ;;  %v364_v27 = vld [vmem:[#allocation5 + $0x4c8] sm:$0xff]  ;;  %v636_v29 = vld [vmem:[#allocation5 + $0x4d8] sm:$0xff] }
  0x71   :  { %1146 = vmatprep.subr.bf16.mxu0 %v1145_v38  ;;  %v615_v38 = vld [vmem:[#allocation5 + $0x2f0] sm:$0xff]  ;;  %v1039_v43 = vpack.c.bf16 %v343_v35, %v341_v34  ;;  %v634_v28 = vld [vmem:[#allocation5 + $0x4a8] sm:$0xff]  ;;  %v363_v34 = vld [vmem:[#allocation5 + $0x4c0] sm:$0xff] }
  0x72   :  { %v633_v35 = vld [vmem:[#allocation5 + $0x4a0] sm:$0xff]  ;;  %v640_v41 = vld [vmem:[#allocation5 + $0x538] sm:$0xff] }
  0x73   :  { %1020 = vmatpush1.bf16.msra.mxu1 %v1019_v44  ;;  %v1167_v44 = vpack.c.bf16 %v615_v38, %v613_v36  ;;  %v1185_v36 = vpack.c.bf16 %v636_v29, %v634_v28  ;;  %v366_v38 = vld [vmem:[#allocation5 + $0x4f8] sm:$0xff] }
  0x74   :  { %1148 = vmatpush1.bf16.msra.mxu0 %v1147_v45  ;;  %1022 = vmatprep.subr.bf16.mxu1 %v1021_v46  ;;  %v1041_v45 = vpack.c.bf16 %v348_v40, %v346_v39  ;;  %v345_v46 = vld [vmem:[#allocation5 + $0x310] sm:$0xff]  ;;  %v368_v39 = vld [vmem:[#allocation5 + $0x528] sm:$0xff]  ;;  %v644_v53 = vld [vmem:[#allocation5 + $0x598] sm:$0xff] }
  0x75   :  { %1150 = vmatprep.subr.bf16.mxu0 %v1149_v50  ;;  %v619_v50 = vld [vmem:[#allocation5 + $0x350] sm:$0xff]  ;;  %v1043_v55 = vpack.c.bf16 %v347_v47, %v345_v46  ;;  %v638_v40 = vld [vmem:[#allocation5 + $0x508] sm:$0xff]  ;;  %v367_v46 = vld [vmem:[#allocation5 + $0x520] sm:$0xff] }
  0x76   :  { %v637_v47 = vld [vmem:[#allocation5 + $0x500] sm:$0xff]  ;;  %v648_v0 = vld [vmem:[#allocation5 + $0x5f8] sm:$0xff] }
  0x77   :  { %1024 = vmatpush1.bf16.msra.mxu1 %v1023_v56  ;;  %v1171_v56 = vpack.c.bf16 %v619_v50, %v617_v48  ;;  %v1189_v48 = vpack.c.bf16 %v640_v41, %v638_v40  ;;  %v370_v50 = vld [vmem:[#allocation5 + $0x558] sm:$0xff] }
  0x78   :  { %1152 = vmatpush1.bf16.msra.mxu0 %v1151_v16  ;;  %1026 = vmatprep.subr.bf16.mxu1 %v1025_v57  ;;  %v1045_v16 = vpack.c.bf16 %v352_v52, %v350_v51  ;;  %v349_v57 = vld [vmem:[#allocation5 + $0x370] sm:$0xff]  ;;  %v372_v51 = vld [vmem:[#allocation5 + $0x588] sm:$0xff]  ;;  %v652_v12 = vld [vmem:[#allocation5 + $0x658] sm:$0xff] }
  0x79   :  { %1154 = vmatprep.subr.bf16.mxu0 %v1153_v61  ;;  %v623_v61 = vld [vmem:[#allocation5 + $0x3b0] sm:$0xff]  ;;  %v1047_v2 = vpack.c.bf16 %v351_v58, %v349_v57  ;;  %v642_v52 = vld [vmem:[#allocation5 + $0x568] sm:$0xff]  ;;  %v371_v57 = vld [vmem:[#allocation5 + $0x580] sm:$0xff] }
  0x7a   :  { %v641_v58 = vld [vmem:[#allocation5 + $0x560] sm:$0xff]  ;;  %v656_v28 = vld [vmem:[#allocation5 + $0x6b8] sm:$0xff] }
  0x7b   :  { %1028 = vmatpush1.bf16.msra.mxu1 %v1027_v3  ;;  %v1175_v3 = vpack.c.bf16 %v623_v61, %v621_v59  ;;  %v1193_v59 = vpack.c.bf16 %v644_v53, %v642_v52  ;;  %v374_v61 = vld [vmem:[#allocation5 + $0x5b8] sm:$0xff] }
  0x7c   :  { %1156 = vmatpush1.bf16.msra.mxu0 %v1155_v4  ;;  %1030 = vmatprep.subr.bf16.mxu1 %v1029_v5  ;;  %v1049_v4 = vpack.c.bf16 %v356_v63, %v354_v62  ;;  %v353_v5 = vld [vmem:[#allocation5 + $0x3d0] sm:$0xff]  ;;  %v376_v62 = vld [vmem:[#allocation5 + $0x5e8] sm:$0xff]  ;;  %v660_v40 = vld [vmem:[#allocation5 + $0x718] sm:$0xff] }
  0x7d   :  { %1158 = vmatprep.subr.bf16.mxu0 %v1157_v9  ;;  %v627_v9 = vld [vmem:[#allocation5 + $0x410] sm:$0xff]  ;;  %v1051_v14 = vpack.c.bf16 %v355_v6, %v353_v5  ;;  %v646_v63 = vld [vmem:[#allocation5 + $0x5c8] sm:$0xff]  ;;  %v375_v5 = vld [vmem:[#allocation5 + $0x5e0] sm:$0xff] }
  0x7e   :  { %v645_v6 = vld [vmem:[#allocation5 + $0x5c0] sm:$0xff]  ;;  %v664_v52 = vld [vmem:[#allocation5 + $0x778] sm:$0xff] }
  0x7f   :  { %1032 = vmatpush1.bf16.msra.mxu1 %v1031_v15  ;;  %v1179_v15 = vpack.c.bf16 %v627_v9, %v625_v7  ;;  %v1197_v7 = vpack.c.bf16 %v648_v0, %v646_v63  ;;  %v378_v9 = vld [vmem:[#allocation5 + $0x618] sm:$0xff] }
  0x80   :  { %1160 = vmatpush1.bf16.msra.mxu0 %v1159_v20  ;;  %1034 = vmatprep.subr.bf16.mxu1 %v1033_v21  ;;  %v1053_v20 = vpack.c.bf16 %v360_v11, %v358_v10  ;;  %v357_v21 = vld [vmem:[#allocation5 + $0x430] sm:$0xff]  ;;  %v380_v10 = vld [vmem:[#allocation5 + $0x648] sm:$0xff] }
  0x81   :  { %1162 = vmatprep.subr.bf16.mxu0 %v1161_v25  ;;  %v631_v25 = vld [vmem:[#allocation5 + $0x470] sm:$0xff]  ;;  %v1055_v30 = vpack.c.bf16 %v359_v22, %v357_v21  ;;  %v650_v11 = vld [vmem:[#allocation5 + $0x628] sm:$0xff]  ;;  %v379_v21 = vld [vmem:[#allocation5 + $0x640] sm:$0xff] }
  0x82   :  { %v649_v22 = vld [vmem:[#allocation5 + $0x620] sm:$0xff] }
  0x83   :  { %1036 = vmatpush1.bf16.msra.mxu1 %v1035_v31  ;;  %v1183_v31 = vpack.c.bf16 %v631_v25, %v629_v23  ;;  %v1201_v23 = vpack.c.bf16 %v652_v12, %v650_v11  ;;  %v382_v25 = vld [vmem:[#allocation5 + $0x678] sm:$0xff] }
  0x84   :  { %1164 = vmatpush1.bf16.msra.mxu0 %v1163_v32  ;;  %1038 = vmatprep.subr.bf16.mxu1 %v1037_v33  ;;  %v1057_v32 = vpack.c.bf16 %v364_v27, %v362_v26  ;;  %v361_v33 = vld [vmem:[#allocation5 + $0x490] sm:$0xff]  ;;  %v384_v26 = vld [vmem:[#allocation5 + $0x6a8] sm:$0xff] }
  0x85   :  { %1166 = vmatprep.subr.bf16.mxu0 %v1165_v37  ;;  %v635_v37 = vld [vmem:[#allocation5 + $0x4d0] sm:$0xff]  ;;  %v1059_v42 = vpack.c.bf16 %v363_v34, %v361_v33  ;;  %v654_v27 = vld [vmem:[#allocation5 + $0x688] sm:$0xff]  ;;  %v383_v33 = vld [vmem:[#allocation5 + $0x6a0] sm:$0xff] }
  0x86   :  { %v653_v34 = vld [vmem:[#allocation5 + $0x680] sm:$0xff] }
  0x87   :  { %1040 = vmatpush1.bf16.msra.mxu1 %v1039_v43  ;;  %v1187_v43 = vpack.c.bf16 %v635_v37, %v633_v35  ;;  %v1205_v35 = vpack.c.bf16 %v656_v28, %v654_v27  ;;  %v386_v37 = vld [vmem:[#allocation5 + $0x6d8] sm:$0xff] }
  0x88   :  { %1168 = vmatpush1.bf16.msra.mxu0 %v1167_v44  ;;  %1042 = vmatprep.subr.bf16.mxu1 %v1041_v45  ;;  %v1061_v44 = vpack.c.bf16 %v368_v39, %v366_v38  ;;  %v365_v45 = vld [vmem:[#allocation5 + $0x4f0] sm:$0xff]  ;;  %v388_v38 = vld [vmem:[#allocation5 + $0x708] sm:$0xff] }
  0x89   :  { %1170 = vmatprep.subr.bf16.mxu0 %v1169_v49  ;;  %v639_v49 = vld [vmem:[#allocation5 + $0x530] sm:$0xff]  ;;  %v1063_v54 = vpack.c.bf16 %v367_v46, %v365_v45  ;;  %v658_v39 = vld [vmem:[#allocation5 + $0x6e8] sm:$0xff]  ;;  %v387_v45 = vld [vmem:[#allocation5 + $0x700] sm:$0xff] }
  0x8a   :  { %v657_v46 = vld [vmem:[#allocation5 + $0x6e0] sm:$0xff] }
  0x8b   :  { %1044 = vmatpush1.bf16.msra.mxu1 %v1043_v55  ;;  %v1191_v55 = vpack.c.bf16 %v639_v49, %v637_v47  ;;  %v1209_v47 = vpack.c.bf16 %v660_v40, %v658_v39  ;;  %v390_v49 = vld [vmem:[#allocation5 + $0x738] sm:$0xff] }
  0x8c   :  { %1172 = vmatpush1.bf16.msra.mxu0 %v1171_v56  ;;  %1046 = vmatprep.subr.bf16.mxu1 %v1045_v16  ;;  %v1065_v56 = vpack.c.bf16 %v372_v51, %v370_v50  ;;  %v369_v16 = vld [vmem:[#allocation5 + $0x550] sm:$0xff]  ;;  %v392_v50 = vld [vmem:[#allocation5 + $0x768] sm:$0xff] }
  0x8d   :  { %1174 = vmatprep.subr.bf16.mxu0 %v1173_v60  ;;  %v643_v60 = vld [vmem:[#allocation5 + $0x590] sm:$0xff]  ;;  %v1067_v1 = vpack.c.bf16 %v371_v57, %v369_v16  ;;  %v662_v51 = vld [vmem:[#allocation5 + $0x748] sm:$0xff]  ;;  %v661_v16 = vld [vmem:[#allocation5 + $0x740] sm:$0xff] }
  0x8e   :  { %v1213_v57 = vpack.c.bf16 %v664_v52, %v662_v51 }
  0x8f   :  { %1048 = vmatpush1.bf16.msra.mxu1 %v1047_v2  ;;  %v1195_v2 = vpack.c.bf16 %v643_v60, %v641_v58  ;;  %v663_v58 = vld [vmem:[#allocation5 + $0x770] sm:$0xff]  ;;  %v396_v60 = vld [vmem:[#allocation5 + $0x7c8] sm:$0xff] }
  0x90   :  { %1176 = vmatpush1.bf16.msra.mxu0 %v1175_v3  ;;  %1050 = vmatprep.subr.bf16.mxu1 %v1049_v4  ;;  %v1069_v3 = vpack.c.bf16 %v376_v62, %v374_v61  ;;  %v373_v4 = vld [vmem:[#allocation5 + $0x5b0] sm:$0xff]  ;;  %v666_v61 = vld [vmem:[#allocation5 + $0x7a8] sm:$0xff]  ;;  %v668_v62 = vld [vmem:[#allocation5 + $0x7d8] sm:$0xff] }
  0x91   :  { %1178 = vmatprep.subr.bf16.mxu0 %v1177_v8  ;;  %v647_v8 = vld [vmem:[#allocation5 + $0x5f0] sm:$0xff]  ;;  %v1071_v13 = vpack.c.bf16 %v375_v5, %v373_v4  ;;  %v1217_v4 = vpack.c.bf16 %v668_v62, %v666_v61 }
  0x92   :  { %v667_v5 = vld [vmem:[#allocation5 + $0x7d0] sm:$0xff] }
  0x93   :  { %1052 = vmatpush1.bf16.msra.mxu1 %v1051_v14  ;;  %v1199_v14 = vpack.c.bf16 %v647_v8, %v645_v6  ;;  %v398_v6 = vld [vmem:[#allocation5 + $0x7f8] sm:$0xff]  ;;  %v670_v8 = vld [vmem:[#allocation5 + $0x808] sm:$0xff] }
  0x94   :  { %1180 = vmatpush1.bf16.msra.mxu0 %v1179_v15  ;;  %1054 = vmatprep.subr.bf16.mxu1 %v1053_v20  ;;  %v1073_v15 = vpack.c.bf16 %v380_v10, %v378_v9  ;;  %v377_v20 = vld [vmem:[#allocation5 + $0x610] sm:$0xff]  ;;  %v672_v9 = vld [vmem:[#allocation5 + $0x838] sm:$0xff] }
  0x95   :  { %1182 = vmatprep.subr.bf16.mxu0 %v1181_v24  ;;  %v651_v24 = vld [vmem:[#allocation5 + $0x650] sm:$0xff]  ;;  %v1075_v29 = vpack.c.bf16 %v379_v21, %v377_v20  ;;  %v1221_v20 = vpack.c.bf16 %v672_v9, %v670_v8 }
  0x96   :  { %v671_v21 = vld [vmem:[#allocation5 + $0x830] sm:$0xff] }
  0x97   :  { %1056 = vmatpush1.bf16.msra.mxu1 %v1055_v30  ;;  %v1203_v30 = vpack.c.bf16 %v651_v24, %v649_v22  ;;  %v402_v22 = vld [vmem:[#allocation5 + $0x858] sm:$0xff]  ;;  %v674_v24 = vld [vmem:[#allocation5 + $0x868] sm:$0xff] }
  0x98   :  { %1184 = vmatpush1.bf16.msra.mxu0 %v1183_v31  ;;  %1058 = vmatprep.subr.bf16.mxu1 %v1057_v32  ;;  %v1077_v31 = vpack.c.bf16 %v384_v26, %v382_v25  ;;  %v381_v32 = vld [vmem:[#allocation5 + $0x670] sm:$0xff]  ;;  %v676_v25 = vld [vmem:[#allocation5 + $0x898] sm:$0xff] }
  0x99   :  { %1186 = vmatprep.subr.bf16.mxu0 %v1185_v36  ;;  %v655_v36 = vld [vmem:[#allocation5 + $0x6b0] sm:$0xff]  ;;  %v1079_v41 = vpack.c.bf16 %v383_v33, %v381_v32  ;;  %v1225_v32 = vpack.c.bf16 %v676_v25, %v674_v24 }
  0x9a   :  { %v675_v33 = vld [vmem:[#allocation5 + $0x890] sm:$0xff] }
  0x9b   :  { %1060 = vmatpush1.bf16.msra.mxu1 %v1059_v42  ;;  %v1207_v42 = vpack.c.bf16 %v655_v36, %v653_v34  ;;  %v406_v34 = vld [vmem:[#allocation5 + $0x8b8] sm:$0xff]  ;;  %v678_v36 = vld [vmem:[#allocation5 + $0x8c8] sm:$0xff] }
  0x9c   :  { %1188 = vmatpush1.bf16.msra.mxu0 %v1187_v43  ;;  %1062 = vmatprep.subr.bf16.mxu1 %v1061_v44  ;;  %v1081_v43 = vpack.c.bf16 %v388_v38, %v386_v37  ;;  %v385_v44 = vld [vmem:[#allocation5 + $0x6d0] sm:$0xff]  ;;  %v680_v37 = vld [vmem:[#allocation5 + $0x8f8] sm:$0xff] }
  0x9d   :  { %1190 = vmatprep.subr.bf16.mxu0 %v1189_v48  ;;  %v659_v48 = vld [vmem:[#allocation5 + $0x710] sm:$0xff] }
  0x9e   :  { %v1211_v53 = vpack.c.bf16 %v659_v48, %v657_v46  ;;  %v410_v46 = vld [vmem:[#allocation5 + $0x918] sm:$0xff]  ;;  %v682_v48 = vld [vmem:[#allocation5 + $0x928] sm:$0xff] }
  0x9f   :  { %1064 = vmatpush1.bf16.msra.mxu1 %v1063_v54  ;;  %v1085_v54 = vpack.c.bf16 %v392_v50, %v390_v49  ;;  %v684_v49 = vld [vmem:[#allocation5 + $0x958] sm:$0xff] }
  0xa0   :  { %1192 = vmatpush1.bf16.msra.mxu0 %v1191_v55  ;;  %1066 = vmatprep.subr.bf16.mxu1 %v1065_v56  ;;  %v389_v55 = vld [vmem:[#allocation5 + $0x730] sm:$0xff]  ;;  %v391_v56 = vld [vmem:[#allocation5 + $0x760] sm:$0xff] }
  0xa1   :  { %1194 = vmatprep.subr.bf16.mxu0 %v1193_v59  ;;  %v394_v59 = vld [vmem:[#allocation5 + $0x798] sm:$0xff]  ;;  %v1087_v63 = vpack.c.bf16 %v391_v56, %v389_v55  ;;  %v1233_v55 = vpack.c.bf16 %v684_v49, %v682_v48  ;;  %v683_v56 = vld [vmem:[#allocation5 + $0x950] sm:$0xff] }
  0xa2   :  { %v1089_v0 = vpack.c.bf16 %v396_v60, %v394_v59  ;;  %v688_v59 = vld [vmem:[#allocation5 + $0x9b8] sm:$0xff] }
  0xa3   :  { %1068 = vmatpush1.bf16.msra.mxu1 %v1067_v1  ;;  %v393_v1 = vld [vmem:[#allocation5 + $0x790] sm:$0xff] }
  0xa4   :  { %1196 = vmatpush1.bf16.msra.mxu0 %v1195_v2  ;;  %1070 = vmatprep.subr.bf16.mxu1 %v1069_v3  ;;  %v395_v2 = vld [vmem:[#allocation5 + $0x7c0] sm:$0xff] }
  0xa5   :  { %1198 = vmatprep.subr.bf16.mxu0 %v1197_v7  ;;  %v665_v3 = vld [vmem:[#allocation5 + $0x7a0] sm:$0xff]  ;;  %v400_v7 = vld [vmem:[#allocation5 + $0x828] sm:$0xff]  ;;  %v1091_v10 = vpack.c.bf16 %v395_v2, %v393_v1  ;;  %v687_v2 = vld [vmem:[#allocation5 + $0x9b0] sm:$0xff] }
  0xa6   :  { %v1219_v11 = vpack.c.bf16 %v667_v5, %v665_v3  ;;  %v1093_v12 = vpack.c.bf16 %v400_v7, %v398_v6  ;;  %v418_v3 = vld [vmem:[#allocation5 + $0x9d8] sm:$0xff]  ;;  %v690_v5 = vld [vmem:[#allocation5 + $0x9e8] sm:$0xff] }
  0xa7   :  { %1072 = vmatpush1.bf16.msra.mxu1 %v1071_v13  ;;  %v397_v13 = vld [vmem:[#allocation5 + $0x7f0] sm:$0xff]  ;;  %v692_v6 = vld [vmem:[#allocation5 + $0xa18] sm:$0xff] }
  0xa8   :  { %1200 = vmatpush1.bf16.msra.mxu0 %v1199_v14  ;;  %1074 = vmatprep.subr.bf16.mxu1 %v1073_v15  ;;  %v399_v14 = vld [vmem:[#allocation5 + $0x820] sm:$0xff] }
  0xa9   :  { %1202 = vmatprep.subr.bf16.mxu0 %v1201_v23  ;;  %v669_v15 = vld [vmem:[#allocation5 + $0x800] sm:$0xff]  ;;  %v404_v23 = vld [vmem:[#allocation5 + $0x888] sm:$0xff]  ;;  %v1095_v26 = vpack.c.bf16 %v399_v14, %v397_v13  ;;  %v1241_v13 = vpack.c.bf16 %v692_v6, %v690_v5  ;;  %v691_v14 = vld [vmem:[#allocation5 + $0xa10] sm:$0xff] }
  0xaa   :  { %506 = vmatmul.mubr.f32.vlgmr.msra.gmra.mrb[2].mxu1 %v1407_v17  ;;  %v1223_v27 = vpack.c.bf16 %v671_v21, %v669_v15  ;;  %v1097_v28 = vpack.c.bf16 %v404_v23, %v402_v22  ;;  %v422_v15 = vld [vmem:[#allocation5 + $0xa38] sm:$0xff]  ;;  %v694_v21 = vld [vmem:[#allocation5 + $0xa48] sm:$0xff] }
  0xab   :  { %1076 = vmatpush1.bf16.msra.mxu1 %v1075_v29  ;;  %778 = vmatmul.mubr.f32.vlgmr.msra.gmra.mrb[2].mxu0 %v1407_v17  ;;  %v1083_v17 = vpack.c.bf16 %v387_v45, %v385_v44  ;;  %v401_v29 = vld [vmem:[#allocation5 + $0x850] sm:$0xff]  ;;  %v1229_v44 = vpack.c.bf16 %v680_v37, %v678_v36  ;;  %v696_v22 = vld [vmem:[#allocation5 + $0xa78] sm:$0xff] }
  0xac   :  { %1204 = vmatpush1.bf16.msra.mxu0 %v1203_v30  ;;  %1078 = vmatprep.subr.bf16.mxu1 %v1077_v31  ;;  %v403_v30 = vld [vmem:[#allocation5 + $0x880] sm:$0xff]  ;;  %v679_v45 = vld [vmem:[#allocation5 + $0x8f0] sm:$0xff] }
  0xad   :  { %1206 = vmatprep.subr.bf16.mxu0 %v1205_v35  ;;  %576 = vmatprep.mubr.f32.mxu1 %v1404_v19  ;;  %v673_v31 = vld [vmem:[#allocation5 + $0x860] sm:$0xff]  ;;  %v408_v35 = vld [vmem:[#allocation5 + $0x8e8] sm:$0xff]  ;;  %v1099_v38 = vpack.c.bf16 %v403_v30, %v401_v29  ;;  %v1245_v29 = vpack.c.bf16 %v696_v22, %v694_v21  ;;  %v695_v30 = vld [vmem:[#allocation5 + $0xa70] sm:$0xff] }
  0xae   :  { %848 = vmatprep.mubr.f32.mxu0 %v1404_v19  ;;  %v1215_v19 = vpack.c.bf16 %v663_v58, %v661_v16  ;;  %v1227_v39 = vpack.c.bf16 %v675_v33, %v673_v31  ;;  %v1101_v40 = vpack.c.bf16 %v408_v35, %v406_v34  ;;  %v414_v16 = vld [vmem:[#allocation5 + $0x978] sm:$0xff]  ;;  %v686_v58 = vld [vmem:[#allocation5 + $0x988] sm:$0xff] }
  0xaf   :  { %1080 = vmatpush1.bf16.msra.mxu1 %v1079_v41  ;;  %v405_v41 = vld [vmem:[#allocation5 + $0x8b0] sm:$0xff]  ;;  %v1237_v1 = vpack.c.bf16 %v688_v59, %v686_v58  ;;  %v426_v31 = vld [vmem:[#allocation5 + $0xa98] sm:$0xff]  ;;  %v698_v33 = vld [vmem:[#allocation5 + $0xaa8] sm:$0xff] }
  0xb0   :  { %1208 = vmatpush1.bf16.msra.mxu0 %v1207_v42  ;;  %1082 = vmatprep.subr.bf16.mxu1 %v1081_v43  ;;  %v407_v42 = vld [vmem:[#allocation5 + $0x8e0] sm:$0xff]  ;;  %v700_v34 = vld [vmem:[#allocation5 + $0xad8] sm:$0xff] }
  0xb1   :  { %1210 = vmatprep.subr.bf16.mxu0 %v1209_v47  ;;  %v677_v43 = vld [vmem:[#allocation5 + $0x8c0] sm:$0xff]  ;;  %v412_v47 = vld [vmem:[#allocation5 + $0x948] sm:$0xff]  ;;  %v1103_v50 = vpack.c.bf16 %v407_v42, %v405_v41  ;;  %v1249_v41 = vpack.c.bf16 %v700_v34, %v698_v33  ;;  %v699_v42 = vld [vmem:[#allocation5 + $0xad0] sm:$0xff] }
  0xb2   :  { %v1231_v51 = vpack.c.bf16 %v679_v45, %v677_v43  ;;  %v1105_v52 = vpack.c.bf16 %v412_v47, %v410_v46  ;;  %v430_v43 = vld [vmem:[#allocation5 + $0xaf8] sm:$0xff]  ;;  %v702_v45 = vld [vmem:[#allocation5 + $0xb08] sm:$0xff] }
  0xb3   :  { %1084 = vmatpush1.bf16.msra.mxu1 %v1083_v17  ;;  %v409_v17 = vld [vmem:[#allocation5 + $0x910] sm:$0xff]  ;;  %v704_v46 = vld [vmem:[#allocation5 + $0xb38] sm:$0xff] }
  0xb4   :  { %1212 = vmatpush1.bf16.msra.mxu0 %v1211_v53  ;;  %1086 = vmatprep.subr.bf16.mxu1 %v1085_v54  ;;  %v411_v53 = vld [vmem:[#allocation5 + $0x940] sm:$0xff] }
  0xb5   :  { %1214 = vmatprep.subr.bf16.mxu0 %v1213_v57  ;;  %v681_v54 = vld [vmem:[#allocation5 + $0x920] sm:$0xff]  ;;  %v416_v57 = vld [vmem:[#allocation5 + $0x9a8] sm:$0xff]  ;;  %v1107_v60 = vpack.c.bf16 %v411_v53, %v409_v17  ;;  %v1253_v17 = vpack.c.bf16 %v704_v46, %v702_v45  ;;  %v703_v53 = vld [vmem:[#allocation5 + $0xb30] sm:$0xff] }
  0xb6   :  { %v1235_v61 = vpack.c.bf16 %v683_v56, %v681_v54  ;;  %v1109_v62 = vpack.c.bf16 %v416_v57, %v414_v16  ;;  %v434_v54 = vld [vmem:[#allocation5 + $0xb58] sm:$0xff]  ;;  %v706_v56 = vld [vmem:[#allocation5 + $0xb68] sm:$0xff] }
  0xb7   :  { %1088 = vmatpush1.bf16.msra.mxu1 %v1087_v63  ;;  %v413_v63 = vld [vmem:[#allocation5 + $0x970] sm:$0xff]  ;;  %v708_v16 = vld [vmem:[#allocation5 + $0xb98] sm:$0xff] }
  0xb8   :  { %1216 = vmatpush1.bf16.msra.mxu0 %v1215_v19  ;;  %1090 = vmatprep.subr.bf16.mxu1 %v1089_v0  ;;  %v415_v19 = vld [vmem:[#allocation5 + $0x9a0] sm:$0xff] }
  0xb9   :  { %1218 = vmatprep.subr.bf16.mxu0 %v1217_v4  ;;  %v685_v0 = vld [vmem:[#allocation5 + $0x980] sm:$0xff]  ;;  %v420_v4 = vld [vmem:[#allocation5 + $0xa08] sm:$0xff]  ;;  %v1111_v7 = vpack.c.bf16 %v415_v19, %v413_v63  ;;  %v1257_v63 = vpack.c.bf16 %v708_v16, %v706_v56  ;;  %v707_v19 = vld [vmem:[#allocation5 + $0xb90] sm:$0xff] }
  0xba   :  { %v1239_v8 = vpack.c.bf16 %v687_v2, %v685_v0  ;;  %v1113_v9 = vpack.c.bf16 %v420_v4, %v418_v3  ;;  %v438_v0 = vld [vmem:[#allocation5 + $0xbb8] sm:$0xff]  ;;  %v710_v2 = vld [vmem:[#allocation5 + $0xbc8] sm:$0xff] }
  0xbb   :  { %1092 = vmatpush1.bf16.msra.mxu1 %v1091_v10  ;;  %v417_v10 = vld [vmem:[#allocation5 + $0x9d0] sm:$0xff]  ;;  %v712_v3 = vld [vmem:[#allocation5 + $0xbf8] sm:$0xff] }
  0xbc   :  { %1220 = vmatpush1.bf16.msra.mxu0 %v1219_v11  ;;  %1094 = vmatprep.subr.bf16.mxu1 %v1093_v12  ;;  %v419_v11 = vld [vmem:[#allocation5 + $0xa00] sm:$0xff] }
  0xbd   :  { %1222 = vmatprep.subr.bf16.mxu0 %v1221_v20  ;;  %v689_v12 = vld [vmem:[#allocation5 + $0x9e0] sm:$0xff]  ;;  %v424_v20 = vld [vmem:[#allocation5 + $0xa68] sm:$0xff]  ;;  %v1115_v23 = vpack.c.bf16 %v419_v11, %v417_v10  ;;  %v711_v11 = vld [vmem:[#allocation5 + $0xbf0] sm:$0xff] }
  0xbe   :  { %v1243_v24 = vpack.c.bf16 %v691_v14, %v689_v12  ;;  %v1117_v25 = vpack.c.bf16 %v424_v20, %v422_v15  ;;  %v709_v10 = vld [vmem:[#allocation5 + $0xbc0] sm:$0xff] }
  0xbf   :  { %1096 = vmatpush1.bf16.msra.mxu1 %v1095_v26  ;;  %v421_v26 = vld [vmem:[#allocation5 + $0xa30] sm:$0xff] }
  0xc0   :  { %1224 = vmatpush1.bf16.msra.mxu0 %v1223_v27  ;;  %1098 = vmatprep.subr.bf16.mxu1 %v1097_v28  ;;  %v423_v27 = vld [vmem:[#allocation5 + $0xa60] sm:$0xff] }
  0xc1   :  { %1226 = vmatprep.subr.bf16.mxu0 %v1225_v32  ;;  %v693_v28 = vld [vmem:[#allocation5 + $0xa40] sm:$0xff]  ;;  %v428_v32 = vld [vmem:[#allocation5 + $0xac8] sm:$0xff]  ;;  %v1119_v35 = vpack.c.bf16 %v423_v27, %v421_v26 }
  0xc2   :  { %v1247_v36 = vpack.c.bf16 %v695_v30, %v693_v28  ;;  %v1121_v37 = vpack.c.bf16 %v428_v32, %v426_v31 }
  0xc3   :  { %1100 = vmatpush1.bf16.msra.mxu1 %v1099_v38  ;;  %v425_v38 = vld [vmem:[#allocation5 + $0xa90] sm:$0xff] }
  0xc4   :  { %1228 = vmatpush1.bf16.msra.mxu0 %v1227_v39  ;;  %1102 = vmatprep.subr.bf16.mxu1 %v1101_v40  ;;  %v427_v39 = vld [vmem:[#allocation5 + $0xac0] sm:$0xff] }
  0xc5   :  { %1230 = vmatprep.subr.bf16.mxu0 %v1229_v44  ;;  %v697_v40 = vld [vmem:[#allocation5 + $0xaa0] sm:$0xff]  ;;  %v432_v44 = vld [vmem:[#allocation5 + $0xb28] sm:$0xff]  ;;  %v1123_v47 = vpack.c.bf16 %v427_v39, %v425_v38 }
  0xc6   :  { %v1251_v48 = vpack.c.bf16 %v699_v42, %v697_v40  ;;  %v1125_v49 = vpack.c.bf16 %v432_v44, %v430_v43 }
  0xc7   :  { %1104 = vmatpush1.bf16.msra.mxu1 %v1103_v50  ;;  %v429_v50 = vld [vmem:[#allocation5 + $0xaf0] sm:$0xff] }
  0xc8   :  { %1232 = vmatpush1.bf16.msra.mxu0 %v1231_v51  ;;  %1106 = vmatprep.subr.bf16.mxu1 %v1105_v52  ;;  %v431_v51 = vld [vmem:[#allocation5 + $0xb20] sm:$0xff] }
  0xc9   :  { %1234 = vmatprep.subr.bf16.mxu0 %v1233_v55  ;;  %v701_v52 = vld [vmem:[#allocation5 + $0xb00] sm:$0xff]  ;;  %v436_v55 = vld [vmem:[#allocation5 + $0xb88] sm:$0xff]  ;;  %v1127_v57 = vpack.c.bf16 %v431_v51, %v429_v50 }
  0xca   :  { %v1255_v58 = vpack.c.bf16 %v703_v53, %v701_v52  ;;  %v1129_v59 = vpack.c.bf16 %v436_v55, %v434_v54 }
  0xcb   :  { %1108 = vmatpush1.bf16.msra.mxu1 %v1107_v60  ;;  %v433_v60 = vld [vmem:[#allocation5 + $0xb50] sm:$0xff] }
  0xcc   :  { %1236 = vmatpush1.bf16.msra.mxu0 %v1235_v61  ;;  %1110 = vmatprep.subr.bf16.mxu1 %v1109_v62  ;;  %v435_v61 = vld [vmem:[#allocation5 + $0xb80] sm:$0xff] }
  0xcd   :  { %1238 = vmatprep.subr.bf16.mxu0 %v1237_v1  ;;  %v705_v62 = vld [vmem:[#allocation5 + $0xb60] sm:$0xff]  ;;  %v440_v1 = vld [vmem:[#allocation5 + $0xbe8] sm:$0xff]  ;;  %v1131_v4 = vpack.c.bf16 %v435_v61, %v433_v60 }
  0xce   :  { %v1259_v5 = vpack.c.bf16 %v707_v19, %v705_v62  ;;  %v1133_v6 = vpack.c.bf16 %v440_v1, %v438_v0 }
  0xcf   :  { %1112 = vmatpush1.bf16.msra.mxu1 %v1111_v7  ;;  %v437_v7 = vld [vmem:[#allocation5 + $0xbb0] sm:$0xff] }
  0xd0   :  { %1240 = vmatpush1.bf16.msra.mxu0 %v1239_v8  ;;  %1114 = vmatprep.subr.bf16.mxu1 %v1113_v9  ;;  %v439_v8 = vld [vmem:[#allocation5 + $0xbe0] sm:$0xff]  ;;  %v1261_v9 = vpack.c.bf16 %v712_v3, %v710_v2 }
  0xd1   :  { %1242 = vmatprep.subr.bf16.mxu0 %v1241_v13  ;;  %v1135_v12 = vpack.c.bf16 %v439_v8, %v437_v7  ;;  %v1263_v13 = vpack.c.bf16 %v711_v11, %v709_v10 }
  0xd3   :  { %1116 = vmatpush1.bf16.msra.mxu1 %v1115_v23 }
  0xd4   :  { %1244 = vmatpush1.bf16.msra.mxu0 %v1243_v24  ;;  %1118 = vmatprep.subr.bf16.mxu1 %v1117_v25 }
  0xd5   :  { %1246 = vmatprep.subr.bf16.mxu0 %v1245_v29 }
  0xd7   :  { %1120 = vmatpush1.bf16.msra.mxu1 %v1119_v35 }
  0xd8   :  { %1248 = vmatpush1.bf16.msra.mxu0 %v1247_v36  ;;  %1122 = vmatprep.subr.bf16.mxu1 %v1121_v37 }
  0xd9   :  { %1250 = vmatprep.subr.bf16.mxu0 %v1249_v41 }
  0xdb   :  { %1124 = vmatpush1.bf16.msra.mxu1 %v1123_v47 }
  0xdc   :  { %1252 = vmatpush1.bf16.msra.mxu0 %v1251_v48  ;;  %1126 = vmatprep.subr.bf16.mxu1 %v1125_v49 }
  0xdd   :  { %1254 = vmatprep.subr.bf16.mxu0 %v1253_v17 }
  0xdf   :  { %1128 = vmatpush1.bf16.msra.mxu1 %v1127_v57 }
  0xe0   :  { %1256 = vmatpush1.bf16.msra.mxu0 %v1255_v58  ;;  %1130 = vmatprep.subr.bf16.mxu1 %v1129_v59 }
  0xe1   :  { %1258 = vmatprep.subr.bf16.mxu0 %v1257_v63 }
  0xe3   :  { %1132 = vmatpush1.bf16.msra.mxu1 %v1131_v4 }
  0xe4   :  { %1260 = vmatpush1.bf16.msra.mxu0 %v1259_v5  ;;  %1134 = vmatprep.subr.bf16.mxu1 %v1133_v6 }
  0xe5   :  { %1262 = vmatprep.subr.bf16.mxu0 %v1261_v9 }
  0xe7   :  { %1136 = vmatpush1.bf16.msra.mxu1 %v1135_v12 }
  0xe8   :  { %1264 = vmatpush1.bf16.msra.mxu0 %v1263_v13 }
  0xea   :  { %577 = vmatmul.mubr.f32.vlgmr.msra.gmra.mrb[2].mxu1 %v1409_v18 }
  0xeb   :  { %849 = vmatmul.mubr.f32.vlgmr.msra.gmra.mrb[2].mxu0 %v1409_v18 }
 0x13d   :  { %v236_v14 = vpop.f32.mrb[0].mxu1 }
 0x13e   :  { %v307_v15 = vpop.f32.mrb[0].mxu0  ;;  %v238_v20 = vpop.f32.mrb[1].mxu1 }
 0x13f   :  { %v308_v21 = vadd.f32 %v307_v15, %v236_v14  ;;  %v309_v22 = vpop.f32.mrb[1].mxu0 }
 0x140   :  { %v310_v23 = vadd.f32 %v309_v22, %v238_v20 }
 0x142   :  { %v312_v24 = vmax.f32 %v308_v21, %v310_v23 }
 0x1bd   :  { %v578_v25 = vpop.f32.mrb[2].mxu1 }
 0x1be   :  { %v583_v26 = vmax.f32 %v312_v24, %v578_v25  ;;  %v850_v27 = vpop.f32.mrb[2].mxu0  ;;  %v580_v28 = vpop.f32.mrb[3].mxu1 }
 0x1bf   :  { %v852_v29 = vpop.f32.mrb[3].mxu0 }
 0x1c0   :  { %v584_v30 = vmax.f32 %v583_v26, %v580_v28 }
 0x1c2   :  { %v855_v31 = vmax.f32 %v584_v30, %v850_v27 }
 0x1c4   :  { %v856_v32 = vmax.f32 %v855_v31, %v852_v29 }
 0x1c6   :  { %v858_v33 = vmin.f32 %v856_v32, 0.0  ;;  %vm857_vm0 = vcmp.gt.f32.partialorder %v856_v32, 0.0 }
 0x1c8   :  { %v859_v34 = vmul.f32 1.442695, %v858_v33 }
 0x1ca   :  { %1276 = vpow2.f32 %v859_v34 }
 0x1d4   :  { %v1277_v18 = vpop.eup %1276 }
 0x1d5   :  { %v880_v35 = vadd.f32 -1.0, %v1277_v18 }
 0x1d7   :  { %v862_v36 = vsel %vm857_vm0, %v856_v32, %v880_v35 }
 0x1d8   :  { %863 = vst [vmem:[#allocation7] sm:$0xff] %v862_v36 }
 0x1d9   :  { %1333 = shalt.err (!%p1330_p6)
}
 0x1da   :  { %s1334_s10 = scalar_lea.hbm %s1435_s2, 128 }
 0x1db   :  { %p1335_p7 = scmp.ne.s32.totalorder %s1435_s2, %s1334_s10  ;;  %p1338_p8 = scmp.lt.u32.totalorder %s1334_s10, %s1435_s2 }
 0x1dd   :  { %p1340_p9 = pnand %p1338_p8, %p1335_p7 }
 0x1df   :  { %1343 = shalt.err (!%p1340_p9)
}
 0x1e0   :  { %873 = dma.vmem_to_hbm [thread:$0]  %s871_s6, 128, %s1435_s2, [#allocation4]  }
 0x1e1   :  { %1348 = dma.done.wait [#allocation4], 128  }
 0x1e2   :  { %1349 = vsyncadd [#allocation4], 4294967168 }
 0x1e3   :  { %877 = vsyncpa [#allocation3], 1 }
 0x1e4   :  { %878 = vsyncpa [#allocation6], 1 }
 0x1e5   :  { %879 = vsyncpa [#allocation4], 1 }

// kernel: tpu_custom_call.1
= control target key start
LH: loop header
LB: loop body
LE: loop exit
PB: predicated region body
PF: predicated region fallthrough
CT: control target
= control target key end

     0   :  { %7 = vsyncpa [#allocation3], 0  ;;  %s1433_s0 = inlined_call_operand.hbm [shape: f32[8,512], index: 0, kind: input, shape index: {}]   ;;  %s1434_s1 = inlined_call_operand.hbm [shape: f32[512,768], index: 1, kind: input, shape index: {}]   ;;  %s1435_s2 = inlined_call_operand.hbm [shape: f32[8,128], index: 2, kind: output, shape index: {}]  }
   0x1   :  { %8 = vsyncpa [#allocation6], 0 }
   0x2   :  { %9 = vsyncpa [#allocation4], 0  ;;  %s1350_s9 = smov [#allocation2]   ;;  %s1351_s11 = smov [#allocation5]  }
   0x3   :  { %s16_s10 = sshll.u32 %s1350_s9, 4  ;;  %s25_s12 = sshll.u32 %s1351_s11, 4  ;;  %s17_s10 = int_to_ptr.vmem [resolvable:$true] %s16_s10  ;;  %s1370_s12 = int_to_ptr.vmem [resolvable:$true] %s25_s12 }
   0x4   :  { %s1278_s15 = scalar_lea.hbm %s1433_s0, 512 }
   0x5   :  { %p1279_p0 = scmp.ne.s32.totalorder %s1433_s0, %s1278_s15  ;;  %p1282_p1 = scmp.lt.u32.totalorder %s1278_s15, %s1433_s0 }
   0x7   :  { %p1284_p2 = pnand %p1282_p1, %p1279_p0 }
   0x9   :  { %1287 = shalt.err (!%p1284_p2)
}
   0xa   :  { %s1288_s20 = scalar_lea.vmem %s17_s10, 512  ;;  %p1293_p4 = scmp.lt.s32.totalorder %s17_s10, %s17_s10 }
   0xb   :  { %p1289_p3 = scmp.ne.s32.totalorder %s17_s10, %s1288_s20  ;;  %p1294_p5 = scmp.lt.s32.totalorder %s1288_s20, %s1288_s20 }
   0xd   :  { %p1295_p6 = por %p1294_p5, %p1293_p4 }
   0xf   :  { %p1296_p7 = pnand %p1295_p6, %p1289_p3 }
  0x11   :  { %1299 = shalt.err (!%p1296_p7)
}
  0x12   :  { %19 = dma.hbm_to_vmem [thread:$0]  %s1433_s0, 512, %s17_s10, [#allocation3]  }
  0x13   :  { %s1300_s25 = scalar_lea.hbm %s1434_s1, 49152 }
  0x14   :  { %p1301_p8 = scmp.ne.s32.totalorder %s1434_s1, %s1300_s25  ;;  %p1304_p9 = scmp.lt.u32.totalorder %s1300_s25, %s1434_s1 }
  0x16   :  { %p1306_p10 = pnand %p1304_p9, %p1301_p8 }
  0x18   :  { %1309 = shalt.err (!%p1306_p10)
}
  0x19   :  { %s1310_s30 = scalar_lea.vmem %s1370_s12, 49152  ;;  %p1315_p12 = scmp.lt.s32.totalorder %s1370_s12, %s1370_s12 }
  0x1a   :  { %p1311_p11 = scmp.ne.s32.totalorder %s1370_s12, %s1310_s30  ;;  %p1316_p13 = scmp.lt.s32.totalorder %s1310_s30, %s1310_s30 }
  0x1c   :  { %p1317_p0 = por %p1316_p13, %p1315_p12 }
  0x1e   :  { %p1318_p1 = pnand %p1317_p0, %p1311_p11 }
  0x20   :  { %1321 = shalt.err (!%p1318_p1)
}
  0x21   :  { %s1352_s0 = smov 768   ;;  %s1353_s3 = smov 48  }
  0x22   :  { %31 = dma.hbm_to_vmem [thread:$0]  %s1434_s1, 49152, %s1370_s12, [#allocation6], %s1352_s0, %s1352_s0, %s1353_s3  }
  0x23   :  { %1344 = dma.done.wait [#allocation3], 512  }
  0x24   :  { %1345 = vsyncadd [#allocation3], 4294966784 }
  0x25   :  { %1346 = dma.done.wait [#allocation6], 49152  }
  0x26   :  { %1347 = vsyncadd [#allocation6], 4294918144  ;;  %v43_v0 = vld [vmem:[#allocation5 + $0x8] sm:$0xff]  ;;  %v45_v1 = vld [vmem:[#allocation5 + $0x38] sm:$0xff]  ;;  %s1354_s1 = smov [#allocation7]  }
  0x27   :  { %v107_v2 = vld [vmem:[#allocation5 + $0x608] sm:$0xff]  ;;  %v881_v3 = vpack.c.bf16 %v45_v1, %v43_v0  ;;  %v109_v4 = vld [vmem:[#allocation5 + $0x638] sm:$0xff]  ;;  %v42_v5 = vld [vmem:[#allocation5] sm:$0xff]  ;;  %s870_s6 = sshll.u32 %s1354_s1, 4  ;;  %s871_s6 = int_to_ptr.vmem [resolvable:$true] %s870_s6 }
  0x28   :  { %v44_v6 = vld [vmem:[#allocation5 + $0x30] sm:$0xff]  ;;  %v945_v7 = vpack.c.bf16 %v109_v4, %v107_v2  ;;  %v106_v9 = vld [vmem:[#allocation5 + $0x600] sm:$0xff]  ;;  %v47_v11 = vld [vmem:[#allocation5 + $0x68] sm:$0xff]  ;;  %s1322_s7 = scalar_lea.vmem %s871_s6, 128  ;;  %p1327_p3 = scmp.lt.s32.totalorder %s871_s6, %s871_s6 }
  0x29   :  { %v883_v8 = vpack.c.bf16 %v44_v6, %v42_v5  ;;  %v108_v10 = vld [vmem:[#allocation5 + $0x630] sm:$0xff]  ;;  %882 = vmatprep.subr.bf16.mxu1 %v881_v3  ;;  %v49_v13 = vld [vmem:[#allocation5 + $0x98] sm:$0xff]  ;;  %v111_v14 = vld [vmem:[#allocation5 + $0x668] sm:$0xff]  ;;  %p1323_p2 = scmp.ne.s32.totalorder %s871_s6, %s1322_s7  ;;  %p1328_p4 = scmp.lt.s32.totalorder %s1322_s7, %s1322_s7 }
  0x2a   :  { %v947_v12 = vpack.c.bf16 %v108_v10, %v106_v9  ;;  %v113_v15 = vld [vmem:[#allocation5 + $0x698] sm:$0xff]  ;;  %946 = vmatprep.subr.bf16.mxu0 %v945_v7  ;;  %v885_v16 = vpack.c.bf16 %v49_v13, %v47_v11  ;;  %v46_v18 = vld [vmem:[#allocation5 + $0x60] sm:$0xff]  ;;  %v48_v19 = vld [vmem:[#allocation5 + $0x90] sm:$0xff] }
  0x2b   :  { %884 = vmatpush1.bf16.msra.mxu1 %v883_v8  ;;  %v949_v17 = vpack.c.bf16 %v113_v15, %v111_v14  ;;  %v110_v20 = vld [vmem:[#allocation5 + $0x660] sm:$0xff]  ;;  %v887_v21 = vpack.c.bf16 %v48_v19, %v46_v18  ;;  %v112_v22 = vld [vmem:[#allocation5 + $0x690] sm:$0xff]  ;;  %v51_v23 = vld [vmem:[#allocation5 + $0xc8] sm:$0xff]  ;;  %p1329_p5 = por %p1328_p4, %p1327_p3 }
  0x2c   :  { %948 = vmatpush1.bf16.msra.mxu0 %v947_v12  ;;  %v53_v24 = vld [vmem:[#allocation5 + $0xf8] sm:$0xff]  ;;  %886 = vmatprep.subr.bf16.mxu1 %v885_v16  ;;  %v951_v25 = vpack.c.bf16 %v112_v22, %v110_v20  ;;  %v115_v27 = vld [vmem:[#allocation5 + $0x6c8] sm:$0xff]  ;;  %v50_v29 = vld [vmem:[#allocation5 + $0xc0] sm:$0xff] }
  0x2d   :  { %950 = vmatprep.subr.bf16.mxu0 %v949_v17  ;;  %v889_v26 = vpack.c.bf16 %v53_v24, %v51_v23  ;;  %v117_v28 = vld [vmem:[#allocation5 + $0x6f8] sm:$0xff]  ;;  %v52_v31 = vld [vmem:[#allocation5 + $0xf0] sm:$0xff]  ;;  %v114_v32 = vld [vmem:[#allocation5 + $0x6c0] sm:$0xff]  ;;  %p1330_p6 = pnand %p1329_p5, %p1323_p2 }
  0x2e   :  { %v953_v30 = vpack.c.bf16 %v117_v28, %v115_v27  ;;  %v116_v33 = vld [vmem:[#allocation5 + $0x6f0] sm:$0xff]  ;;  %v891_v34 = vpack.c.bf16 %v52_v31, %v50_v29  ;;  %v55_v35 = vld [vmem:[#allocation5 + $0x128] sm:$0xff]  ;;  %v57_v36 = vld [vmem:[#allocation5 + $0x158] sm:$0xff] }
  0x2f   :  { %888 = vmatpush1.bf16.msra.mxu1 %v887_v21  ;;  %v119_v37 = vld [vmem:[#allocation5 + $0x728] sm:$0xff]  ;;  %v955_v38 = vpack.c.bf16 %v116_v33, %v114_v32  ;;  %v893_v39 = vpack.c.bf16 %v57_v36, %v55_v35  ;;  %v121_v40 = vld [vmem:[#allocation5 + $0x758] sm:$0xff]  ;;  %v54_v41 = vld [vmem:[#allocation5 + $0x120] sm:$0xff] }
  0x30   :  { %952 = vmatpush1.bf16.msra.mxu0 %v951_v25  ;;  %890 = vmatprep.subr.bf16.mxu1 %v889_v26  ;;  %v56_v42 = vld [vmem:[#allocation5 + $0x150] sm:$0xff]  ;;  %v957_v43 = vpack.c.bf16 %v121_v40, %v119_v37  ;;  %v118_v44 = vld [vmem:[#allocation5 + $0x720] sm:$0xff]  ;;  %v59_v46 = vld [vmem:[#allocation5 + $0x188] sm:$0xff] }
  0x31   :  { %954 = vmatprep.subr.bf16.mxu0 %v953_v30  ;;  %v120_v45 = vld [vmem:[#allocation5 + $0x750] sm:$0xff]  ;;  %v61_v47 = vld [vmem:[#allocation5 + $0x1b8] sm:$0xff]  ;;  %v123_v48 = vld [vmem:[#allocation5 + $0x788] sm:$0xff]  ;;  %v895_v50 = vpack.c.bf16 %v56_v42, %v54_v41 }
  0x32   :  { %v125_v49 = vld [vmem:[#allocation5 + $0x7b8] sm:$0xff]  ;;  %v959_v51 = vpack.c.bf16 %v120_v45, %v118_v44  ;;  %v897_v52 = vpack.c.bf16 %v61_v47, %v59_v46  ;;  %v58_v53 = vld [vmem:[#allocation5 + $0x180] sm:$0xff]  ;;  %v60_v54 = vld [vmem:[#allocation5 + $0x1b0] sm:$0xff] }
  0x33   :  { %892 = vmatpush1.bf16.msra.mxu1 %v891_v34  ;;  %v122_v55 = vld [vmem:[#allocation5 + $0x780] sm:$0xff]  ;;  %v961_v56 = vpack.c.bf16 %v125_v49, %v123_v48  ;;  %v124_v57 = vld [vmem:[#allocation5 + $0x7b0] sm:$0xff]  ;;  %v63_v58 = vld [vmem:[#allocation5 + $0x1e8] sm:$0xff]  ;;  %v899_v62 = vpack.c.bf16 %v60_v54, %v58_v53 }
  0x34   :  { %956 = vmatpush1.bf16.msra.mxu0 %v955_v38  ;;  %894 = vmatprep.subr.bf16.mxu1 %v893_v39  ;;  %v65_v59 = vld [vmem:[#allocation5 + $0x218] sm:$0xff]  ;;  %v127_v60 = vld [vmem:[#allocation5 + $0x7e8] sm:$0xff]  ;;  %v963_v63 = vpack.c.bf16 %v124_v57, %v122_v55  ;;  %v62_v1 = vld [vmem:[#allocation5 + $0x1e0] sm:$0xff] }
  0x35   :  { %958 = vmatprep.subr.bf16.mxu0 %v957_v43  ;;  %v129_v61 = vld [vmem:[#allocation5 + $0x818] sm:$0xff]  ;;  %v901_v0 = vpack.c.bf16 %v65_v59, %v63_v58  ;;  %v64_v2 = vld [vmem:[#allocation5 + $0x210] sm:$0xff]  ;;  %v126_v3 = vld [vmem:[#allocation5 + $0x7e0] sm:$0xff] }
  0x36   :  { %v965_v4 = vpack.c.bf16 %v129_v61, %v127_v60  ;;  %v128_v5 = vld [vmem:[#allocation5 + $0x810] sm:$0xff]  ;;  %v67_v6 = vld [vmem:[#allocation5 + $0x248] sm:$0xff]  ;;  %v69_v7 = vld [vmem:[#allocation5 + $0x278] sm:$0xff]  ;;  %v903_v10 = vpack.c.bf16 %v64_v2, %v62_v1 }
  0x37   :  { %896 = vmatpush1.bf16.msra.mxu1 %v895_v50  ;;  %v131_v8 = vld [vmem:[#allocation5 + $0x848] sm:$0xff]  ;;  %v133_v9 = vld [vmem:[#allocation5 + $0x878] sm:$0xff]  ;;  %v967_v11 = vpack.c.bf16 %v128_v5, %v126_v3  ;;  %v905_v12 = vpack.c.bf16 %v69_v7, %v67_v6  ;;  %v66_v13 = vld [vmem:[#allocation5 + $0x240] sm:$0xff] }
  0x38   :  { %960 = vmatpush1.bf16.msra.mxu0 %v959_v51  ;;  %898 = vmatprep.subr.bf16.mxu1 %v897_v52  ;;  %v68_v14 = vld [vmem:[#allocation5 + $0x270] sm:$0xff]  ;;  %v130_v15 = vld [vmem:[#allocation5 + $0x840] sm:$0xff]  ;;  %v969_v16 = vpack.c.bf16 %v133_v9, %v131_v8  ;;  %v71_v18 = vld [vmem:[#allocation5 + $0x2a8] sm:$0xff] }
  0x39   :  { %962 = vmatprep.subr.bf16.mxu0 %v961_v56  ;;  %v132_v17 = vld [vmem:[#allocation5 + $0x870] sm:$0xff]  ;;  %v73_v19 = vld [vmem:[#allocation5 + $0x2d8] sm:$0xff]  ;;  %v135_v20 = vld [vmem:[#allocation5 + $0x8a8] sm:$0xff]  ;;  %v907_v22 = vpack.c.bf16 %v68_v14, %v66_v13 }
  0x3a   :  { %v137_v21 = vld [vmem:[#allocation5 + $0x8d8] sm:$0xff]  ;;  %v971_v23 = vpack.c.bf16 %v132_v17, %v130_v15  ;;  %v909_v24 = vpack.c.bf16 %v73_v19, %v71_v18  ;;  %v70_v25 = vld [vmem:[#allocation5 + $0x2a0] sm:$0xff]  ;;  %v72_v26 = vld [vmem:[#allocation5 + $0x2d0] sm:$0xff] }
  0x3b   :  { %900 = vmatpush1.bf16.msra.mxu1 %v899_v62  ;;  %v134_v27 = vld [vmem:[#allocation5 + $0x8a0] sm:$0xff]  ;;  %v973_v28 = vpack.c.bf16 %v137_v21, %v135_v20  ;;  %v136_v29 = vld [vmem:[#allocation5 + $0x8d0] sm:$0xff]  ;;  %v75_v30 = vld [vmem:[#allocation5 + $0x308] sm:$0xff]  ;;  %v911_v34 = vpack.c.bf16 %v72_v26, %v70_v25 }
  0x3c   :  { %964 = vmatpush1.bf16.msra.mxu0 %v963_v63  ;;  %902 = vmatprep.subr.bf16.mxu1 %v901_v0  ;;  %v77_v31 = vld [vmem:[#allocation5 + $0x338] sm:$0xff]  ;;  %v139_v32 = vld [vmem:[#allocation5 + $0x908] sm:$0xff]  ;;  %v975_v35 = vpack.c.bf16 %v136_v29, %v134_v27  ;;  %v74_v37 = vld [vmem:[#allocation5 + $0x300] sm:$0xff] }
  0x3d   :  { %966 = vmatprep.subr.bf16.mxu0 %v965_v4  ;;  %v141_v33 = vld [vmem:[#allocation5 + $0x938] sm:$0xff]  ;;  %v913_v36 = vpack.c.bf16 %v77_v31, %v75_v30  ;;  %v76_v38 = vld [vmem:[#allocation5 + $0x330] sm:$0xff]  ;;  %v138_v39 = vld [vmem:[#allocation5 + $0x900] sm:$0xff] }
  0x3e   :  { %v977_v40 = vpack.c.bf16 %v141_v33, %v139_v32  ;;  %v140_v41 = vld [vmem:[#allocation5 + $0x930] sm:$0xff]  ;;  %v79_v42 = vld [vmem:[#allocation5 + $0x368] sm:$0xff]  ;;  %v81_v43 = vld [vmem:[#allocation5 + $0x398] sm:$0xff]  ;;  %v915_v46 = vpack.c.bf16 %v76_v38, %v74_v37 }
  0x3f   :  { %904 = vmatpush1.bf16.msra.mxu1 %v903_v10  ;;  %v143_v44 = vld [vmem:[#allocation5 + $0x968] sm:$0xff]  ;;  %v145_v45 = vld [vmem:[#allocation5 + $0x998] sm:$0xff]  ;;  %v979_v47 = vpack.c.bf16 %v140_v41, %v138_v39  ;;  %v917_v48 = vpack.c.bf16 %v81_v43, %v79_v42  ;;  %v78_v49 = vld [vmem:[#allocation5 + $0x360] sm:$0xff] }
  0x40   :  { %968 = vmatpush1.bf16.msra.mxu0 %v967_v11  ;;  %906 = vmatprep.subr.bf16.mxu1 %v905_v12  ;;  %v80_v50 = vld [vmem:[#allocation5 + $0x390] sm:$0xff]  ;;  %v142_v51 = vld [vmem:[#allocation5 + $0x960] sm:$0xff]  ;;  %v981_v52 = vpack.c.bf16 %v145_v45, %v143_v44  ;;  %v83_v54 = vld [vmem:[#allocation5 + $0x3c8] sm:$0xff] }
  0x41   :  { %970 = vmatprep.subr.bf16.mxu0 %v969_v16  ;;  %v144_v53 = vld [vmem:[#allocation5 + $0x990] sm:$0xff]  ;;  %v85_v55 = vld [vmem:[#allocation5 + $0x3f8] sm:$0xff]  ;;  %v147_v56 = vld [vmem:[#allocation5 + $0x9c8] sm:$0xff]  ;;  %v919_v58 = vpack.c.bf16 %v80_v50, %v78_v49 }
  0x42   :  { %v149_v57 = vld [vmem:[#allocation5 + $0x9f8] sm:$0xff]  ;;  %v983_v59 = vpack.c.bf16 %v144_v53, %v142_v51  ;;  %v921_v60 = vpack.c.bf16 %v85_v55, %v83_v54  ;;  %v82_v61 = vld [vmem:[#allocation5 + $0x3c0] sm:$0xff]  ;;  %v84_v62 = vld [vmem:[#allocation5 + $0x3f0] sm:$0xff] }
  0x43   :  { %908 = vmatpush1.bf16.msra.mxu1 %v907_v22  ;;  %v146_v63 = vld [vmem:[#allocation5 + $0x9c0] sm:$0xff]  ;;  %v985_v0 = vpack.c.bf16 %v149_v57, %v147_v56  ;;  %v148_v1 = vld [vmem:[#allocation5 + $0x9f0] sm:$0xff]  ;;  %v87_v2 = vld [vmem:[#allocation5 + $0x428] sm:$0xff]  ;;  %v923_v6 = vpack.c.bf16 %v84_v62, %v82_v61 }
  0x44   :  { %972 = vmatpush1.bf16.msra.mxu0 %v971_v23  ;;  %910 = vmatprep.subr.bf16.mxu1 %v909_v24  ;;  %v89_v3 = vld [vmem:[#allocation5 + $0x458] sm:$0xff]  ;;  %v151_v4 = vld [vmem:[#allocation5 + $0xa28] sm:$0xff]  ;;  %v86_v7 = vld [vmem:[#allocation5 + $0x420] sm:$0xff]  ;;  %v987_v8 = vpack.c.bf16 %v148_v1, %v146_v63 }
  0x45   :  { %974 = vmatprep.subr.bf16.mxu0 %v973_v28  ;;  %v153_v5 = vld [vmem:[#allocation5 + $0xa58] sm:$0xff]  ;;  %v925_v9 = vpack.c.bf16 %v89_v3, %v87_v2  ;;  %v88_v10 = vld [vmem:[#allocation5 + $0x450] sm:$0xff]  ;;  %v150_v11 = vld [vmem:[#allocation5 + $0xa20] sm:$0xff] }
  0x46   :  { %v152_v12 = vld [vmem:[#allocation5 + $0xa50] sm:$0xff]  ;;  %v989_v13 = vpack.c.bf16 %v153_v5, %v151_v4  ;;  %v91_v14 = vld [vmem:[#allocation5 + $0x488] sm:$0xff]  ;;  %v93_v15 = vld [vmem:[#allocation5 + $0x4b8] sm:$0xff]  ;;  %v927_v20 = vpack.c.bf16 %v88_v10, %v86_v7 }
  0x47   :  { %912 = vmatpush1.bf16.msra.mxu1 %v911_v34  ;;  %v1401_v16 = vld [vmem:[#allocation2 + $0x8] sm:$0xff]  ;;  %v157_v18 = vld [vmem:[#allocation5 + $0xab8] sm:$0xff]  ;;  %v991_v21 = vpack.c.bf16 %v152_v12, %v150_v11  ;;  %v929_v22 = vpack.c.bf16 %v93_v15, %v91_v14  ;;  %v90_v23 = vld [vmem:[#allocation5 + $0x480] sm:$0xff] }
  0x48   :  { %976 = vmatpush1.bf16.msra.mxu0 %v975_v35  ;;  %914 = vmatprep.subr.bf16.mxu1 %v913_v36  ;;  %v155_v17 = vld [vmem:[#allocation5 + $0xa88] sm:$0xff]  ;;  %v1404_v19 = vld [vmem:[#allocation2 + $0x18] sm:$0xff]  ;;  %v92_v24 = vld [vmem:[#allocation5 + $0x4b0] sm:$0xff] }
  0x49   :  { %978 = vmatprep.subr.bf16.mxu0 %v977_v40  ;;  %234 = vmatprep.mubr.f32.mxu1 %v1401_v16  ;;  %v154_v25 = vld [vmem:[#allocation5 + $0xa80] sm:$0xff]  ;;  %v993_v26 = vpack.c.bf16 %v157_v18, %v155_v17  ;;  %v156_v27 = vld [vmem:[#allocation5 + $0xab0] sm:$0xff]  ;;  %v95_v28 = vld [vmem:[#allocation5 + $0x4e8] sm:$0xff]  ;;  %v931_v32 = vpack.c.bf16 %v92_v24, %v90_v23 }
  0x4a   :  { %305 = vmatprep.mubr.f32.mxu0 %v1404_v19  ;;  %v97_v29 = vld [vmem:[#allocation5 + $0x518] sm:$0xff]  ;;  %v159_v30 = vld [vmem:[#allocation5 + $0xae8] sm:$0xff]  ;;  %v995_v33 = vpack.c.bf16 %v156_v27, %v154_v25  ;;  %v94_v35 = vld [vmem:[#allocation5 + $0x4e0] sm:$0xff] }
  0x4b   :  { %916 = vmatpush1.bf16.msra.mxu1 %v915_v46  ;;  %v161_v31 = vld [vmem:[#allocation5 + $0xb18] sm:$0xff]  ;;  %v933_v34 = vpack.c.bf16 %v97_v29, %v95_v28  ;;  %v96_v36 = vld [vmem:[#allocation5 + $0x510] sm:$0xff]  ;;  %v158_v37 = vld [vmem:[#allocation5 + $0xae0] sm:$0xff] }
  0x4c   :  { %980 = vmatpush1.bf16.msra.mxu0 %v979_v47  ;;  %918 = vmatprep.subr.bf16.mxu1 %v917_v48  ;;  %v997_v38 = vpack.c.bf16 %v161_v31, %v159_v30  ;;  %v160_v39 = vld [vmem:[#allocation5 + $0xb10] sm:$0xff]  ;;  %v99_v40 = vld [vmem:[#allocation5 + $0x548] sm:$0xff]  ;;  %v101_v41 = vld [vmem:[#allocation5 + $0x578] sm:$0xff]  ;;  %v935_v44 = vpack.c.bf16 %v96_v36, %v94_v35 }
  0x4d   :  { %982 = vmatprep.subr.bf16.mxu0 %v981_v52  ;;  %v163_v42 = vld [vmem:[#allocation5 + $0xb48] sm:$0xff]  ;;  %v165_v43 = vld [vmem:[#allocation5 + $0xb78] sm:$0xff]  ;;  %v999_v45 = vpack.c.bf16 %v160_v39, %v158_v37  ;;  %v937_v46 = vpack.c.bf16 %v101_v41, %v99_v40  ;;  %v98_v47 = vld [vmem:[#allocation5 + $0x540] sm:$0xff] }
  0x4e   :  { %v100_v48 = vld [vmem:[#allocation5 + $0x570] sm:$0xff]  ;;  %v162_v49 = vld [vmem:[#allocation5 + $0xb40] sm:$0xff]  ;;  %v1001_v50 = vpack.c.bf16 %v165_v43, %v163_v42  ;;  %v103_v52 = vld [vmem:[#allocation5 + $0x5a8] sm:$0xff] }
  0x4f   :  { %920 = vmatpush1.bf16.msra.mxu1 %v919_v58  ;;  %v164_v51 = vld [vmem:[#allocation5 + $0xb70] sm:$0xff]  ;;  %v105_v53 = vld [vmem:[#allocation5 + $0x5d8] sm:$0xff]  ;;  %v167_v54 = vld [vmem:[#allocation5 + $0xba8] sm:$0xff]  ;;  %v939_v56 = vpack.c.bf16 %v100_v48, %v98_v47 }
  0x50   :  { %984 = vmatpush1.bf16.msra.mxu0 %v983_v59  ;;  %922 = vmatprep.subr.bf16.mxu1 %v921_v60  ;;  %v169_v55 = vld [vmem:[#allocation5 + $0xbd8] sm:$0xff]  ;;  %v1003_v57 = vpack.c.bf16 %v164_v51, %v162_v49  ;;  %v941_v58 = vpack.c.bf16 %v105_v53, %v103_v52  ;;  %v102_v59 = vld [vmem:[#allocation5 + $0x5a0] sm:$0xff]  ;;  %v104_v60 = vld [vmem:[#allocation5 + $0x5d0] sm:$0xff] }
  0x51   :  { %986 = vmatprep.subr.bf16.mxu0 %v985_v0  ;;  %v166_v61 = vld [vmem:[#allocation5 + $0xba0] sm:$0xff]  ;;  %v1005_v62 = vpack.c.bf16 %v169_v55, %v167_v54  ;;  %v168_v63 = vld [vmem:[#allocation5 + $0xbd0] sm:$0xff]  ;;  %v314_v0 = vld [vmem:[#allocation5 + $0x18] sm:$0xff]  ;;  %v943_v4 = vpack.c.bf16 %v104_v60, %v102_v59 }
  0x52   :  { %v316_v1 = vld [vmem:[#allocation5 + $0x48] sm:$0xff]  ;;  %v588_v3 = vld [vmem:[#allocation5 + $0x58] sm:$0xff]  ;;  %v1007_v5 = vpack.c.bf16 %v168_v63, %v166_v61  ;;  %v313_v7 = vld [vmem:[#allocation5 + $0x10] sm:$0xff] }
  0x53   :  { %924 = vmatpush1.bf16.msra.mxu1 %v923_v6  ;;  %v586_v2 = vld [vmem:[#allocation5 + $0x28] sm:$0xff]  ;;  %v1009_v6 = vpack.c.bf16 %v316_v1, %v314_v0  ;;  %v587_v11 = vld [vmem:[#allocation5 + $0x50] sm:$0xff]  ;;  %v318_v12 = vld [vmem:[#allocation5 + $0x78] sm:$0xff] }
  0x54   :  { %988 = vmatpush1.bf16.msra.mxu0 %v987_v8  ;;  %926 = vmatprep.subr.bf16.mxu1 %v925_v9  ;;  %v315_v8 = vld [vmem:[#allocation5 + $0x40] sm:$0xff]  ;;  %v1137_v10 = vpack.c.bf16 %v588_v3, %v586_v2  ;;  %v590_v14 = vld [vmem:[#allocation5 + $0x88] sm:$0xff]  ;;  %v592_v15 = vld [vmem:[#allocation5 + $0xb8] sm:$0xff] }
  0x55   :  { %990 = vmatprep.subr.bf16.mxu0 %v989_v13  ;;  %v585_v9 = vld [vmem:[#allocation5 + $0x20] sm:$0xff]  ;;  %v320_v13 = vld [vmem:[#allocation5 + $0xa8] sm:$0xff]  ;;  %v1409_v18 = vld [vmem:[#allocation2 + $0x10] sm:$0xff] }
  0x56   :  { %v1407_v17 = vld [vmem:[#allocation2] sm:$0xff]  ;;  %v317_v23 = vld [vmem:[#allocation5 + $0x70] sm:$0xff]  ;;  %v322_v28 = vld [vmem:[#allocation5 + $0xd8] sm:$0xff] }
  0x57   :  { %928 = vmatpush1.bf16.msra.mxu1 %v927_v20  ;;  %v1011_v20 = vpack.c.bf16 %v315_v8, %v313_v7  ;;  %v319_v24 = vld [vmem:[#allocation5 + $0xa0] sm:$0xff]  ;;  %v591_v27 = vld [vmem:[#allocation5 + $0xb0] sm:$0xff]  ;;  %v324_v29 = vld [vmem:[#allocation5 + $0x108] sm:$0xff] }
  0x58   :  { %992 = vmatpush1.bf16.msra.mxu0 %v991_v21  ;;  %930 = vmatprep.subr.bf16.mxu1 %v929_v22  ;;  %v1139_v21 = vpack.c.bf16 %v587_v11, %v585_v9  ;;  %v1013_v22 = vpack.c.bf16 %v320_v13, %v318_v12  ;;  %v589_v25 = vld [vmem:[#allocation5 + $0x80] sm:$0xff]  ;;  %v594_v30 = vld [vmem:[#allocation5 + $0xe8] sm:$0xff]  ;;  %v596_v31 = vld [vmem:[#allocation5 + $0x118] sm:$0xff] }
  0x59   :  { %994 = vmatprep.subr.bf16.mxu0 %v993_v26  ;;  %v1141_v26 = vpack.c.bf16 %v592_v15, %v590_v14  ;;  %v321_v35 = vld [vmem:[#allocation5 + $0xd0] sm:$0xff]  ;;  %v323_v36 = vld [vmem:[#allocation5 + $0x100] sm:$0xff]  ;;  %v326_v40 = vld [vmem:[#allocation5 + $0x138] sm:$0xff] }
  0x5a   :  { %v593_v37 = vld [vmem:[#allocation5 + $0xe0] sm:$0xff]  ;;  %v595_v39 = vld [vmem:[#allocation5 + $0x110] sm:$0xff]  ;;  %v328_v41 = vld [vmem:[#allocation5 + $0x168] sm:$0xff] }
  0x5b   :  { %932 = vmatpush1.bf16.msra.mxu1 %v931_v32  ;;  %v1015_v32 = vpack.c.bf16 %v319_v24, %v317_v23  ;;  %v598_v42 = vld [vmem:[#allocation5 + $0x148] sm:$0xff]  ;;  %v600_v43 = vld [vmem:[#allocation5 + $0x178] sm:$0xff]  ;;  %v325_v47 = vld [vmem:[#allocation5 + $0x130] sm:$0xff] }
  0x5c   :  { %996 = vmatpush1.bf16.msra.mxu0 %v995_v33  ;;  %934 = vmatprep.subr.bf16.mxu1 %v933_v34  ;;  %v1143_v33 = vpack.c.bf16 %v591_v27, %v589_v25  ;;  %v1017_v34 = vpack.c.bf16 %v324_v29, %v322_v28  ;;  %v327_v48 = vld [vmem:[#allocation5 + $0x160] sm:$0xff]  ;;  %v599_v51 = vld [vmem:[#allocation5 + $0x170] sm:$0xff]  ;;  %v330_v52 = vld [vmem:[#allocation5 + $0x198] sm:$0xff] }
  0x5d   :  { %998 = vmatprep.subr.bf16.mxu0 %v997_v38  ;;  %v1145_v38 = vpack.c.bf16 %v596_v31, %v594_v30  ;;  %v597_v49 = vld [vmem:[#allocation5 + $0x140] sm:$0xff]  ;;  %v332_v53 = vld [vmem:[#allocation5 + $0x1c8] sm:$0xff]  ;;  %v604_v55 = vld [vmem:[#allocation5 + $0x1d8] sm:$0xff] }
  0x5e   :  { %v602_v54 = vld [vmem:[#allocation5 + $0x1a8] sm:$0xff]  ;;  %v331_v59 = vld [vmem:[#allocation5 + $0x1c0] sm:$0xff]  ;;  %v334_v63 = vld [vmem:[#allocation5 + $0x1f8] sm:$0xff] }
  0x5f   :  { %936 = vmatpush1.bf16.msra.mxu1 %v935_v44  ;;  %v1019_v44 = vpack.c.bf16 %v323_v36, %v321_v35  ;;  %v601_v60 = vld [vmem:[#allocation5 + $0x1a0] sm:$0xff]  ;;  %v1153_v61 = vpack.c.bf16 %v604_v55, %v602_v54  ;;  %v336_v0 = vld [vmem:[#allocation5 + $0x228] sm:$0xff]  ;;  %v608_v2 = vld [vmem:[#allocation5 + $0x238] sm:$0xff] }
  0x60   :  { %1000 = vmatpush1.bf16.msra.mxu0 %v999_v45  ;;  %938 = vmatprep.subr.bf16.mxu1 %v937_v46  ;;  %v1147_v45 = vpack.c.bf16 %v595_v39, %v593_v37  ;;  %v1021_v46 = vpack.c.bf16 %v328_v41, %v326_v40  ;;  %v606_v1 = vld [vmem:[#allocation5 + $0x208] sm:$0xff]  ;;  %v335_v7 = vld [vmem:[#allocation5 + $0x220] sm:$0xff]  ;;  %v338_v11 = vld [vmem:[#allocation5 + $0x258] sm:$0xff] }
  0x61   :  { %1002 = vmatprep.subr.bf16.mxu0 %v1001_v50  ;;  %v1149_v50 = vpack.c.bf16 %v600_v43, %v598_v42  ;;  %v605_v8 = vld [vmem:[#allocation5 + $0x200] sm:$0xff]  ;;  %v1157_v9 = vpack.c.bf16 %v608_v2, %v606_v1  ;;  %v340_v12 = vld [vmem:[#allocation5 + $0x288] sm:$0xff]  ;;  %v612_v14 = vld [vmem:[#allocation5 + $0x298] sm:$0xff] }
  0x62   :  { %v610_v13 = vld [vmem:[#allocation5 + $0x268] sm:$0xff]  ;;  %v339_v23 = vld [vmem:[#allocation5 + $0x280] sm:$0xff]  ;;  %v342_v27 = vld [vmem:[#allocation5 + $0x2b8] sm:$0xff] }
  0x63   :  { %940 = vmatpush1.bf16.msra.mxu1 %v939_v56  ;;  %v1023_v56 = vpack.c.bf16 %v327_v48, %v325_v47  ;;  %v609_v24 = vld [vmem:[#allocation5 + $0x260] sm:$0xff]  ;;  %v1161_v25 = vpack.c.bf16 %v612_v14, %v610_v13  ;;  %v344_v28 = vld [vmem:[#allocation5 + $0x2e8] sm:$0xff]  ;;  %v616_v30 = vld [vmem:[#allocation5 + $0x2f8] sm:$0xff] }
  0x64   :  { %1004 = vmatpush1.bf16.msra.mxu0 %v1003_v57  ;;  %942 = vmatprep.subr.bf16.mxu1 %v941_v58  ;;  %v1025_v57 = vpack.c.bf16 %v332_v53, %v330_v52  ;;  %v329_v58 = vld [vmem:[#allocation5 + $0x190] sm:$0xff]  ;;  %v614_v29 = vld [vmem:[#allocation5 + $0x2c8] sm:$0xff]  ;;  %v343_v35 = vld [vmem:[#allocation5 + $0x2e0] sm:$0xff] }
  0x65   :  { %1006 = vmatprep.subr.bf16.mxu0 %v1005_v62  ;;  %v603_v62 = vld [vmem:[#allocation5 + $0x1d0] sm:$0xff]  ;;  %v1027_v3 = vpack.c.bf16 %v331_v59, %v329_v58  ;;  %v613_v36 = vld [vmem:[#allocation5 + $0x2c0] sm:$0xff]  ;;  %v1165_v37 = vpack.c.bf16 %v616_v30, %v614_v29  ;;  %v346_v39 = vld [vmem:[#allocation5 + $0x318] sm:$0xff] }
  0x66   :  { %v348_v40 = vld [vmem:[#allocation5 + $0x348] sm:$0xff]  ;;  %v620_v42 = vld [vmem:[#allocation5 + $0x358] sm:$0xff]  ;;  %v347_v47 = vld [vmem:[#allocation5 + $0x340] sm:$0xff] }
  0x67   :  { %944 = vmatpush1.bf16.msra.mxu1 %v943_v4  ;;  %v1155_v4 = vpack.c.bf16 %v603_v62, %v601_v60  ;;  %v618_v41 = vld [vmem:[#allocation5 + $0x328] sm:$0xff]  ;;  %v617_v48 = vld [vmem:[#allocation5 + $0x320] sm:$0xff]  ;;  %v624_v54 = vld [vmem:[#allocation5 + $0x3b8] sm:$0xff] }
  0x68   :  { %1008 = vmatpush1.bf16.msra.mxu0 %v1007_v5  ;;  %1010 = vmatprep.subr.bf16.mxu1 %v1009_v6  ;;  %v1029_v5 = vpack.c.bf16 %v336_v0, %v334_v63  ;;  %v333_v6 = vld [vmem:[#allocation5 + $0x1f0] sm:$0xff]  ;;  %v352_v52 = vld [vmem:[#allocation5 + $0x3a8] sm:$0xff]  ;;  %v351_v58 = vld [vmem:[#allocation5 + $0x3a0] sm:$0xff] }
  0x69   :  { %1138 = vmatprep.subr.bf16.mxu0 %v1137_v10  ;;  %v607_v10 = vld [vmem:[#allocation5 + $0x230] sm:$0xff]  ;;  %v1031_v15 = vpack.c.bf16 %v335_v7, %v333_v6  ;;  %v622_v53 = vld [vmem:[#allocation5 + $0x388] sm:$0xff]  ;;  %v621_v59 = vld [vmem:[#allocation5 + $0x380] sm:$0xff] }
  0x6a   :  { %235 = vmatmul.mubr.f32.vlgmr.msra.gmra.mrb[0].mxu1 %v1407_v17  ;;  %v1173_v60 = vpack.c.bf16 %v624_v54, %v622_v53  ;;  %v354_v62 = vld [vmem:[#allocation5 + $0x3d8] sm:$0xff]  ;;  %v356_v63 = vld [vmem:[#allocation5 + $0x408] sm:$0xff]  ;;  %v355_v6 = vld [vmem:[#allocation5 + $0x400] sm:$0xff] }
  0x6b   :  { %306 = vmatmul.mubr.f32.vlgmr.msra.gmra.mrb[0].mxu0 %v1409_v18  ;;  %1012 = vmatpush1.bf16.msra.mxu1 %v1011_v20  ;;  %v1159_v20 = vpack.c.bf16 %v607_v10, %v605_v8  ;;  %v626_v0 = vld [vmem:[#allocation5 + $0x3e8] sm:$0xff]  ;;  %v628_v1 = vld [vmem:[#allocation5 + $0x418] sm:$0xff]  ;;  %v625_v7 = vld [vmem:[#allocation5 + $0x3e0] sm:$0xff] }
  0x6c   :  { %1140 = vmatpush1.bf16.msra.mxu0 %v1139_v21  ;;  %1014 = vmatprep.subr.bf16.mxu1 %v1013_v22  ;;  %v1033_v21 = vpack.c.bf16 %v340_v12, %v338_v11  ;;  %v337_v22 = vld [vmem:[#allocation5 + $0x250] sm:$0xff]  ;;  %v1177_v8 = vpack.c.bf16 %v628_v1, %v626_v0  ;;  %v358_v10 = vld [vmem:[#allocation5 + $0x438] sm:$0xff]  ;;  %v360_v11 = vld [vmem:[#allocation5 + $0x468] sm:$0xff] }
  0x6d   :  { %1142 = vmatprep.subr.bf16.mxu0 %v1141_v26  ;;  %505 = vmatprep.mubr.f32.mxu1 %v1401_v16  ;;  %v611_v26 = vld [vmem:[#allocation5 + $0x290] sm:$0xff]  ;;  %v1035_v31 = vpack.c.bf16 %v339_v23, %v337_v22  ;;  %v630_v12 = vld [vmem:[#allocation5 + $0x448] sm:$0xff]  ;;  %v632_v13 = vld [vmem:[#allocation5 + $0x478] sm:$0xff] }
  0x6e   :  { %777 = vmatprep.mubr.f32.mxu0 %v1401_v16  ;;  %v1151_v16 = vpack.c.bf16 %v599_v51, %v597_v49  ;;  %v1169_v49 = vpack.c.bf16 %v620_v42, %v618_v41  ;;  %v350_v51 = vld [vmem:[#allocation5 + $0x378] sm:$0xff]  ;;  %v359_v22 = vld [vmem:[#allocation5 + $0x460] sm:$0xff] }
  0x6f   :  { %1016 = vmatpush1.bf16.msra.mxu1 %v1015_v32  ;;  %v1163_v32 = vpack.c.bf16 %v611_v26, %v609_v24  ;;  %v629_v23 = vld [vmem:[#allocation5 + $0x440] sm:$0xff]  ;;  %v1181_v24 = vpack.c.bf16 %v632_v13, %v630_v12  ;;  %v362_v26 = vld [vmem:[#allocation5 + $0x498] sm:$0xff] }
  0x70   :  { %1144 = vmatpush1.bf16.msra.mxu0 %v1143_v33  ;;  %1018 = vmatprep.subr.bf16.mxu1 %v1017_v34  ;;  %v1037_v33 = vpack.c.bf16 %v344_v28, %v342_v27  ;;  %v341_v34 = vld [vmem:[#allocation5 + $0x2b0] sm:$0xff]  ;;  %v364_v27 = vld [vmem:[#allocation5 + $0x4c8] sm:$0xff]  ;;  %v636_v29 = vld [vmem:[#allocation5 + $0x4d8] sm:$0xff] }
  0x71   :  { %1146 = vmatprep.subr.bf16.mxu0 %v1145_v38  ;;  %v615_v38 = vld [vmem:[#allocation5 + $0x2f0] sm:$0xff]  ;;  %v1039_v43 = vpack.c.bf16 %v343_v35, %v341_v34  ;;  %v634_v28 = vld [vmem:[#allocation5 + $0x4a8] sm:$0xff]  ;;  %v363_v34 = vld [vmem:[#allocation5 + $0x4c0] sm:$0xff] }
  0x72   :  { %v633_v35 = vld [vmem:[#allocation5 + $0x4a0] sm:$0xff]  ;;  %v640_v41 = vld [vmem:[#allocation5 + $0x538] sm:$0xff] }
  0x73   :  { %1020 = vmatpush1.bf16.msra.mxu1 %v1019_v44  ;;  %v1167_v44 = vpack.c.bf16 %v615_v38, %v613_v36  ;;  %v1185_v36 = vpack.c.bf16 %v636_v29, %v634_v28  ;;  %v366_v38 = vld [vmem:[#allocation5 + $0x4f8] sm:$0xff] }
  0x74   :  { %1148 = vmatpush1.bf16.msra.mxu0 %v1147_v45  ;;  %1022 = vmatprep.subr.bf16.mxu1 %v1021_v46  ;;  %v1041_v45 = vpack.c.bf16 %v348_v40, %v346_v39  ;;  %v345_v46 = vld [vmem:[#allocation5 + $0x310] sm:$0xff]  ;;  %v368_v39 = vld [vmem:[#allocation5 + $0x528] sm:$0xff]  ;;  %v644_v53 = vld [vmem:[#allocation5 + $0x598] sm:$0xff] }
  0x75   :  { %1150 = vmatprep.subr.bf16.mxu0 %v1149_v50  ;;  %v619_v50 = vld [vmem:[#allocation5 + $0x350] sm:$0xff]  ;;  %v1043_v55 = vpack.c.bf16 %v347_v47, %v345_v46  ;;  %v638_v40 = vld [vmem:[#allocation5 + $0x508] sm:$0xff]  ;;  %v367_v46 = vld [vmem:[#allocation5 + $0x520] sm:$0xff] }
  0x76   :  { %v637_v47 = vld [vmem:[#allocation5 + $0x500] sm:$0xff]  ;;  %v648_v0 = vld [vmem:[#allocation5 + $0x5f8] sm:$0xff] }
  0x77   :  { %1024 = vmatpush1.bf16.msra.mxu1 %v1023_v56  ;;  %v1171_v56 = vpack.c.bf16 %v619_v50, %v617_v48  ;;  %v1189_v48 = vpack.c.bf16 %v640_v41, %v638_v40  ;;  %v370_v50 = vld [vmem:[#allocation5 + $0x558] sm:$0xff] }
  0x78   :  { %1152 = vmatpush1.bf16.msra.mxu0 %v1151_v16  ;;  %1026 = vmatprep.subr.bf16.mxu1 %v1025_v57  ;;  %v1045_v16 = vpack.c.bf16 %v352_v52, %v350_v51  ;;  %v349_v57 = vld [vmem:[#allocation5 + $0x370] sm:$0xff]  ;;  %v372_v51 = vld [vmem:[#allocation5 + $0x588] sm:$0xff]  ;;  %v652_v12 = vld [vmem:[#allocation5 + $0x658] sm:$0xff] }
  0x79   :  { %1154 = vmatprep.subr.bf16.mxu0 %v1153_v61  ;;  %v623_v61 = vld [vmem:[#allocation5 + $0x3b0] sm:$0xff]  ;;  %v1047_v2 = vpack.c.bf16 %v351_v58, %v349_v57  ;;  %v642_v52 = vld [vmem:[#allocation5 + $0x568] sm:$0xff]  ;;  %v371_v57 = vld [vmem:[#allocation5 + $0x580] sm:$0xff] }
  0x7a   :  { %v641_v58 = vld [vmem:[#allocation5 + $0x560] sm:$0xff]  ;;  %v656_v28 = vld [vmem:[#allocation5 + $0x6b8] sm:$0xff] }
  0x7b   :  { %1028 = vmatpush1.bf16.msra.mxu1 %v1027_v3  ;;  %v1175_v3 = vpack.c.bf16 %v623_v61, %v621_v59  ;;  %v1193_v59 = vpack.c.bf16 %v644_v53, %v642_v52  ;;  %v374_v61 = vld [vmem:[#allocation5 + $0x5b8] sm:$0xff] }
  0x7c   :  { %1156 = vmatpush1.bf16.msra.mxu0 %v1155_v4  ;;  %1030 = vmatprep.subr.bf16.mxu1 %v1029_v5  ;;  %v1049_v4 = vpack.c.bf16 %v356_v63, %v354_v62  ;;  %v353_v5 = vld [vmem:[#allocation5 + $0x3d0] sm:$0xff]  ;;  %v376_v62 = vld [vmem:[#allocation5 + $0x5e8] sm:$0xff]  ;;  %v660_v40 = vld [vmem:[#allocation5 + $0x718] sm:$0xff] }
  0x7d   :  { %1158 = vmatprep.subr.bf16.mxu0 %v1157_v9  ;;  %v627_v9 = vld [vmem:[#allocation5 + $0x410] sm:$0xff]  ;;  %v1051_v14 = vpack.c.bf16 %v355_v6, %v353_v5  ;;  %v646_v63 = vld [vmem:[#allocation5 + $0x5c8] sm:$0xff]  ;;  %v375_v5 = vld [vmem:[#allocation5 + $0x5e0] sm:$0xff] }
  0x7e   :  { %v645_v6 = vld [vmem:[#allocation5 + $0x5c0] sm:$0xff]  ;;  %v664_v52 = vld [vmem:[#allocation5 + $0x778] sm:$0xff] }
  0x7f   :  { %1032 = vmatpush1.bf16.msra.mxu1 %v1031_v15  ;;  %v1179_v15 = vpack.c.bf16 %v627_v9, %v625_v7  ;;  %v1197_v7 = vpack.c.bf16 %v648_v0, %v646_v63  ;;  %v378_v9 = vld [vmem:[#allocation5 + $0x618] sm:$0xff] }
  0x80   :  { %1160 = vmatpush1.bf16.msra.mxu0 %v1159_v20  ;;  %1034 = vmatprep.subr.bf16.mxu1 %v1033_v21  ;;  %v1053_v20 = vpack.c.bf16 %v360_v11, %v358_v10  ;;  %v357_v21 = vld [vmem:[#allocation5 + $0x430] sm:$0xff]  ;;  %v380_v10 = vld [vmem:[#allocation5 + $0x648] sm:$0xff] }
  0x81   :  { %1162 = vmatprep.subr.bf16.mxu0 %v1161_v25  ;;  %v631_v25 = vld [vmem:[#allocation5 + $0x470] sm:$0xff]  ;;  %v1055_v30 = vpack.c.bf16 %v359_v22, %v357_v21  ;;  %v650_v11 = vld [vmem:[#allocation5 + $0x628] sm:$0xff]  ;;  %v379_v21 = vld [vmem:[#allocation5 + $0x640] sm:$0xff] }
  0x82   :  { %v649_v22 = vld [vmem:[#allocation5 + $0x620] sm:$0xff] }
  0x83   :  { %1036 = vmatpush1.bf16.msra.mxu1 %v1035_v31  ;;  %v1183_v31 = vpack.c.bf16 %v631_v25, %v629_v23  ;;  %v1201_v23 = vpack.c.bf16 %v652_v12, %v650_v11  ;;  %v382_v25 = vld [vmem:[#allocation5 + $0x678] sm:$0xff] }
  0x84   :  { %1164 = vmatpush1.bf16.msra.mxu0 %v1163_v32  ;;  %1038 = vmatprep.subr.bf16.mxu1 %v1037_v33  ;;  %v1057_v32 = vpack.c.bf16 %v364_v27, %v362_v26  ;;  %v361_v33 = vld [vmem:[#allocation5 + $0x490] sm:$0xff]  ;;  %v384_v26 = vld [vmem:[#allocation5 + $0x6a8] sm:$0xff] }
  0x85   :  { %1166 = vmatprep.subr.bf16.mxu0 %v1165_v37  ;;  %v635_v37 = vld [vmem:[#allocation5 + $0x4d0] sm:$0xff]  ;;  %v1059_v42 = vpack.c.bf16 %v363_v34, %v361_v33  ;;  %v654_v27 = vld [vmem:[#allocation5 + $0x688] sm:$0xff]  ;;  %v383_v33 = vld [vmem:[#allocation5 + $0x6a0] sm:$0xff] }
  0x86   :  { %v653_v34 = vld [vmem:[#allocation5 + $0x680] sm:$0xff] }
  0x87   :  { %1040 = vmatpush1.bf16.msra.mxu1 %v1039_v43  ;;  %v1187_v43 = vpack.c.bf16 %v635_v37, %v633_v35  ;;  %v1205_v35 = vpack.c.bf16 %v656_v28, %v654_v27  ;;  %v386_v37 = vld [vmem:[#allocation5 + $0x6d8] sm:$0xff] }
  0x88   :  { %1168 = vmatpush1.bf16.msra.mxu0 %v1167_v44  ;;  %1042 = vmatprep.subr.bf16.mxu1 %v1041_v45  ;;  %v1061_v44 = vpack.c.bf16 %v368_v39, %v366_v38  ;;  %v365_v45 = vld [vmem:[#allocation5 + $0x4f0] sm:$0xff]  ;;  %v388_v38 = vld [vmem:[#allocation5 + $0x708] sm:$0xff] }
  0x89   :  { %1170 = vmatprep.subr.bf16.mxu0 %v1169_v49  ;;  %v639_v49 = vld [vmem:[#allocation5 + $0x530] sm:$0xff]  ;;  %v1063_v54 = vpack.c.bf16 %v367_v46, %v365_v45  ;;  %v658_v39 = vld [vmem:[#allocation5 + $0x6e8] sm:$0xff]  ;;  %v387_v45 = vld [vmem:[#allocation5 + $0x700] sm:$0xff] }
  0x8a   :  { %v657_v46 = vld [vmem:[#allocation5 + $0x6e0] sm:$0xff] }
  0x8b   :  { %1044 = vmatpush1.bf16.msra.mxu1 %v1043_v55  ;;  %v1191_v55 = vpack.c.bf16 %v639_v49, %v637_v47  ;;  %v1209_v47 = vpack.c.bf16 %v660_v40, %v658_v39  ;;  %v390_v49 = vld [vmem:[#allocation5 + $0x738] sm:$0xff] }
  0x8c   :  { %1172 = vmatpush1.bf16.msra.mxu0 %v1171_v56  ;;  %1046 = vmatprep.subr.bf16.mxu1 %v1045_v16  ;;  %v1065_v56 = vpack.c.bf16 %v372_v51, %v370_v50  ;;  %v369_v16 = vld [vmem:[#allocation5 + $0x550] sm:$0xff]  ;;  %v392_v50 = vld [vmem:[#allocation5 + $0x768] sm:$0xff] }
  0x8d   :  { %1174 = vmatprep.subr.bf16.mxu0 %v1173_v60  ;;  %v643_v60 = vld [vmem:[#allocation5 + $0x590] sm:$0xff]  ;;  %v1067_v1 = vpack.c.bf16 %v371_v57, %v369_v16  ;;  %v662_v51 = vld [vmem:[#allocation5 + $0x748] sm:$0xff]  ;;  %v661_v16 = vld [vmem:[#allocation5 + $0x740] sm:$0xff] }
  0x8e   :  { %v1213_v57 = vpack.c.bf16 %v664_v52, %v662_v51 }
  0x8f   :  { %1048 = vmatpush1.bf16.msra.mxu1 %v1047_v2  ;;  %v1195_v2 = vpack.c.bf16 %v643_v60, %v641_v58  ;;  %v663_v58 = vld [vmem:[#allocation5 + $0x770] sm:$0xff]  ;;  %v396_v60 = vld [vmem:[#allocation5 + $0x7c8] sm:$0xff] }
  0x90   :  { %1176 = vmatpush1.bf16.msra.mxu0 %v1175_v3  ;;  %1050 = vmatprep.subr.bf16.mxu1 %v1049_v4  ;;  %v1069_v3 = vpack.c.bf16 %v376_v62, %v374_v61  ;;  %v373_v4 = vld [vmem:[#allocation5 + $0x5b0] sm:$0xff]  ;;  %v666_v61 = vld [vmem:[#allocation5 + $0x7a8] sm:$0xff]  ;;  %v668_v62 = vld [vmem:[#allocation5 + $0x7d8] sm:$0xff] }
  0x91   :  { %1178 = vmatprep.subr.bf16.mxu0 %v1177_v8  ;;  %v647_v8 = vld [vmem:[#allocation5 + $0x5f0] sm:$0xff]  ;;  %v1071_v13 = vpack.c.bf16 %v375_v5, %v373_v4  ;;  %v1217_v4 = vpack.c.bf16 %v668_v62, %v666_v61 }
  0x92   :  { %v667_v5 = vld [vmem:[#allocation5 + $0x7d0] sm:$0xff] }
  0x93   :  { %1052 = vmatpush1.bf16.msra.mxu1 %v1051_v14  ;;  %v1199_v14 = vpack.c.bf16 %v647_v8, %v645_v6  ;;  %v398_v6 = vld [vmem:[#allocation5 + $0x7f8] sm:$0xff]  ;;  %v670_v8 = vld [vmem:[#allocation5 + $0x808] sm:$0xff] }
  0x94   :  { %1180 = vmatpush1.bf16.msra.mxu0 %v1179_v15  ;;  %1054 = vmatprep.subr.bf16.mxu1 %v1053_v20  ;;  %v1073_v15 = vpack.c.bf16 %v380_v10, %v378_v9  ;;  %v377_v20 = vld [vmem:[#allocation5 + $0x610] sm:$0xff]  ;;  %v672_v9 = vld [vmem:[#allocation5 + $0x838] sm:$0xff] }
  0x95   :  { %1182 = vmatprep.subr.bf16.mxu0 %v1181_v24  ;;  %v651_v24 = vld [vmem:[#allocation5 + $0x650] sm:$0xff]  ;;  %v1075_v29 = vpack.c.bf16 %v379_v21, %v377_v20  ;;  %v1221_v20 = vpack.c.bf16 %v672_v9, %v670_v8 }
  0x96   :  { %v671_v21 = vld [vmem:[#allocation5 + $0x830] sm:$0xff] }
  0x97   :  { %1056 = vmatpush1.bf16.msra.mxu1 %v1055_v30  ;;  %v1203_v30 = vpack.c.bf16 %v651_v24, %v649_v22  ;;  %v402_v22 = vld [vmem:[#allocation5 + $0x858] sm:$0xff]  ;;  %v674_v24 = vld [vmem:[#allocation5 + $0x868] sm:$0xff] }
  0x98   :  { %1184 = vmatpush1.bf16.msra.mxu0 %v1183_v31  ;;  %1058 = vmatprep.subr.bf16.mxu1 %v1057_v32  ;;  %v1077_v31 = vpack.c.bf16 %v384_v26, %v382_v25  ;;  %v381_v32 = vld [vmem:[#allocation5 + $0x670] sm:$0xff]  ;;  %v676_v25 = vld [vmem:[#allocation5 + $0x898] sm:$0xff] }
  0x99   :  { %1186 = vmatprep.subr.bf16.mxu0 %v1185_v36  ;;  %v655_v36 = vld [vmem:[#allocation5 + $0x6b0] sm:$0xff]  ;;  %v1079_v41 = vpack.c.bf16 %v383_v33, %v381_v32  ;;  %v1225_v32 = vpack.c.bf16 %v676_v25, %v674_v24 }
  0x9a   :  { %v675_v33 = vld [vmem:[#allocation5 + $0x890] sm:$0xff] }
  0x9b   :  { %1060 = vmatpush1.bf16.msra.mxu1 %v1059_v42  ;;  %v1207_v42 = vpack.c.bf16 %v655_v36, %v653_v34  ;;  %v406_v34 = vld [vmem:[#allocation5 + $0x8b8] sm:$0xff]  ;;  %v678_v36 = vld [vmem:[#allocation5 + $0x8c8] sm:$0xff] }
  0x9c   :  { %1188 = vmatpush1.bf16.msra.mxu0 %v1187_v43  ;;  %1062 = vmatprep.subr.bf16.mxu1 %v1061_v44  ;;  %v1081_v43 = vpack.c.bf16 %v388_v38, %v386_v37  ;;  %v385_v44 = vld [vmem:[#allocation5 + $0x6d0] sm:$0xff]  ;;  %v680_v37 = vld [vmem:[#allocation5 + $0x8f8] sm:$0xff] }
  0x9d   :  { %1190 = vmatprep.subr.bf16.mxu0 %v1189_v48  ;;  %v659_v48 = vld [vmem:[#allocation5 + $0x710] sm:$0xff] }
  0x9e   :  { %v1211_v53 = vpack.c.bf16 %v659_v48, %v657_v46  ;;  %v410_v46 = vld [vmem:[#allocation5 + $0x918] sm:$0xff]  ;;  %v682_v48 = vld [vmem:[#allocation5 + $0x928] sm:$0xff] }
  0x9f   :  { %1064 = vmatpush1.bf16.msra.mxu1 %v1063_v54  ;;  %v1085_v54 = vpack.c.bf16 %v392_v50, %v390_v49  ;;  %v684_v49 = vld [vmem:[#allocation5 + $0x958] sm:$0xff] }
  0xa0   :  { %1192 = vmatpush1.bf16.msra.mxu0 %v1191_v55  ;;  %1066 = vmatprep.subr.bf16.mxu1 %v1065_v56  ;;  %v389_v55 = vld [vmem:[#allocation5 + $0x730] sm:$0xff]  ;;  %v391_v56 = vld [vmem:[#allocation5 + $0x760] sm:$0xff] }
  0xa1   :  { %1194 = vmatprep.subr.bf16.mxu0 %v1193_v59  ;;  %v394_v59 = vld [vmem:[#allocation5 + $0x798] sm:$0xff]  ;;  %v1087_v63 = vpack.c.bf16 %v391_v56, %v389_v55  ;;  %v1233_v55 = vpack.c.bf16 %v684_v49, %v682_v48  ;;  %v683_v56 = vld [vmem:[#allocation5 + $0x950] sm:$0xff] }
  0xa2   :  { %v1089_v0 = vpack.c.bf16 %v396_v60, %v394_v59  ;;  %v688_v59 = vld [vmem:[#allocation5 + $0x9b8] sm:$0xff] }
  0xa3   :  { %1068 = vmatpush1.bf16.msra.mxu1 %v1067_v1  ;;  %v393_v1 = vld [vmem:[#allocation5 + $0x790] sm:$0xff] }
  0xa4   :  { %1196 = vmatpush1.bf16.msra.mxu0 %v1195_v2  ;;  %1070 = vmatprep.subr.bf16.mxu1 %v1069_v3  ;;  %v395_v2 = vld [vmem:[#allocation5 + $0x7c0] sm:$0xff] }
  0xa5   :  { %1198 = vmatprep.subr.bf16.mxu0 %v1197_v7  ;;  %v665_v3 = vld [vmem:[#allocation5 + $0x7a0] sm:$0xff]  ;;  %v400_v7 = vld [vmem:[#allocation5 + $0x828] sm:$0xff]  ;;  %v1091_v10 = vpack.c.bf16 %v395_v2, %v393_v1  ;;  %v687_v2 = vld [vmem:[#allocation5 + $0x9b0] sm:$0xff] }
  0xa6   :  { %v1219_v11 = vpack.c.bf16 %v667_v5, %v665_v3  ;;  %v1093_v12 = vpack.c.bf16 %v400_v7, %v398_v6  ;;  %v418_v3 = vld [vmem:[#allocation5 + $0x9d8] sm:$0xff]  ;;  %v690_v5 = vld [vmem:[#allocation5 + $0x9e8] sm:$0xff] }
  0xa7   :  { %1072 = vmatpush1.bf16.msra.mxu1 %v1071_v13  ;;  %v397_v13 = vld [vmem:[#allocation5 + $0x7f0] sm:$0xff]  ;;  %v692_v6 = vld [vmem:[#allocation5 + $0xa18] sm:$0xff] }
  0xa8   :  { %1200 = vmatpush1.bf16.msra.mxu0 %v1199_v14  ;;  %1074 = vmatprep.subr.bf16.mxu1 %v1073_v15  ;;  %v399_v14 = vld [vmem:[#allocation5 + $0x820] sm:$0xff] }
  0xa9   :  { %1202 = vmatprep.subr.bf16.mxu0 %v1201_v23  ;;  %v669_v15 = vld [vmem:[#allocation5 + $0x800] sm:$0xff]  ;;  %v404_v23 = vld [vmem:[#allocation5 + $0x888] sm:$0xff]  ;;  %v1095_v26 = vpack.c.bf16 %v399_v14, %v397_v13  ;;  %v1241_v13 = vpack.c.bf16 %v692_v6, %v690_v5  ;;  %v691_v14 = vld [vmem:[#allocation5 + $0xa10] sm:$0xff] }
  0xaa   :  { %506 = vmatmul.mubr.f32.vlgmr.msra.gmra.mrb[2].mxu1 %v1407_v17  ;;  %v1223_v27 = vpack.c.bf16 %v671_v21, %v669_v15  ;;  %v1097_v28 = vpack.c.bf16 %v404_v23, %v402_v22  ;;  %v422_v15 = vld [vmem:[#allocation5 + $0xa38] sm:$0xff]  ;;  %v694_v21 = vld [vmem:[#allocation5 + $0xa48] sm:$0xff] }
  0xab   :  { %1076 = vmatpush1.bf16.msra.mxu1 %v1075_v29  ;;  %778 = vmatmul.mubr.f32.vlgmr.msra.gmra.mrb[2].mxu0 %v1407_v17  ;;  %v1083_v17 = vpack.c.bf16 %v387_v45, %v385_v44  ;;  %v401_v29 = vld [vmem:[#allocation5 + $0x850] sm:$0xff]  ;;  %v1229_v44 = vpack.c.bf16 %v680_v37, %v678_v36  ;;  %v696_v22 = vld [vmem:[#allocation5 + $0xa78] sm:$0xff] }
  0xac   :  { %1204 = vmatpush1.bf16.msra.mxu0 %v1203_v30  ;;  %1078 = vmatprep.subr.bf16.mxu1 %v1077_v31  ;;  %v403_v30 = vld [vmem:[#allocation5 + $0x880] sm:$0xff]  ;;  %v679_v45 = vld [vmem:[#allocation5 + $0x8f0] sm:$0xff] }
  0xad   :  { %1206 = vmatprep.subr.bf16.mxu0 %v1205_v35  ;;  %576 = vmatprep.mubr.f32.mxu1 %v1404_v19  ;;  %v673_v31 = vld [vmem:[#allocation5 + $0x860] sm:$0xff]  ;;  %v408_v35 = vld [vmem:[#allocation5 + $0x8e8] sm:$0xff]  ;;  %v1099_v38 = vpack.c.bf16 %v403_v30, %v401_v29  ;;  %v1245_v29 = vpack.c.bf16 %v696_v22, %v694_v21  ;;  %v695_v30 = vld [vmem:[#allocation5 + $0xa70] sm:$0xff] }
  0xae   :  { %848 = vmatprep.mubr.f32.mxu0 %v1404_v19  ;;  %v1215_v19 = vpack.c.bf16 %v663_v58, %v661_v16  ;;  %v1227_v39 = vpack.c.bf16 %v675_v33, %v673_v31  ;;  %v1101_v40 = vpack.c.bf16 %v408_v35, %v406_v34  ;;  %v414_v16 = vld [vmem:[#allocation5 + $0x978] sm:$0xff]  ;;  %v686_v58 = vld [vmem:[#allocation5 + $0x988] sm:$0xff] }
  0xaf   :  { %1080 = vmatpush1.bf16.msra.mxu1 %v1079_v41  ;;  %v405_v41 = vld [vmem:[#allocation5 + $0x8b0] sm:$0xff]  ;;  %v1237_v1 = vpack.c.bf16 %v688_v59, %v686_v58  ;;  %v426_v31 = vld [vmem:[#allocation5 + $0xa98] sm:$0xff]  ;;  %v698_v33 = vld [vmem:[#allocation5 + $0xaa8] sm:$0xff] }
  0xb0   :  { %1208 = vmatpush1.bf16.msra.mxu0 %v1207_v42  ;;  %1082 = vmatprep.subr.bf16.mxu1 %v1081_v43  ;;  %v407_v42 = vld [vmem:[#allocation5 + $0x8e0] sm:$0xff]  ;;  %v700_v34 = vld [vmem:[#allocation5 + $0xad8] sm:$0xff] }
  0xb1   :  { %1210 = vmatprep.subr.bf16.mxu0 %v1209_v47  ;;  %v677_v43 = vld [vmem:[#allocation5 + $0x8c0] sm:$0xff]  ;;  %v412_v47 = vld [vmem:[#allocation5 + $0x948] sm:$0xff]  ;;  %v1103_v50 = vpack.c.bf16 %v407_v42, %v405_v41  ;;  %v1249_v41 = vpack.c.bf16 %v700_v34, %v698_v33  ;;  %v699_v42 = vld [vmem:[#allocation5 + $0xad0] sm:$0xff] }
  0xb2   :  { %v1231_v51 = vpack.c.bf16 %v679_v45, %v677_v43  ;;  %v1105_v52 = vpack.c.bf16 %v412_v47, %v410_v46  ;;  %v430_v43 = vld [vmem:[#allocation5 + $0xaf8] sm:$0xff]  ;;  %v702_v45 = vld [vmem:[#allocation5 + $0xb08] sm:$0xff] }
  0xb3   :  { %1084 = vmatpush1.bf16.msra.mxu1 %v1083_v17  ;;  %v409_v17 = vld [vmem:[#allocation5 + $0x910] sm:$0xff]  ;;  %v704_v46 = vld [vmem:[#allocation5 + $0xb38] sm:$0xff] }
  0xb4   :  { %1212 = vmatpush1.bf16.msra.mxu0 %v1211_v53  ;;  %1086 = vmatprep.subr.bf16.mxu1 %v1085_v54  ;;  %v411_v53 = vld [vmem:[#allocation5 + $0x940] sm:$0xff] }
  0xb5   :  { %1214 = vmatprep.subr.bf16.mxu0 %v1213_v57  ;;  %v681_v54 = vld [vmem:[#allocation5 + $0x920] sm:$0xff]  ;;  %v416_v57 = vld [vmem:[#allocation5 + $0x9a8] sm:$0xff]  ;;  %v1107_v60 = vpack.c.bf16 %v411_v53, %v409_v17  ;;  %v1253_v17 = vpack.c.bf16 %v704_v46, %v702_v45  ;;  %v703_v53 = vld [vmem:[#allocation5 + $0xb30] sm:$0xff] }
  0xb6   :  { %v1235_v61 = vpack.c.bf16 %v683_v56, %v681_v54  ;;  %v1109_v62 = vpack.c.bf16 %v416_v57, %v414_v16  ;;  %v434_v54 = vld [vmem:[#allocation5 + $0xb58] sm:$0xff]  ;;  %v706_v56 = vld [vmem:[#allocation5 + $0xb68] sm:$0xff] }
  0xb7   :  { %1088 = vmatpush1.bf16.msra.mxu1 %v1087_v63  ;;  %v413_v63 = vld [vmem:[#allocation5 + $0x970] sm:$0xff]  ;;  %v708_v16 = vld [vmem:[#allocation5 + $0xb98] sm:$0xff] }
  0xb8   :  { %1216 = vmatpush1.bf16.msra.mxu0 %v1215_v19  ;;  %1090 = vmatprep.subr.bf16.mxu1 %v1089_v0  ;;  %v415_v19 = vld [vmem:[#allocation5 + $0x9a0] sm:$0xff] }
  0xb9   :  { %1218 = vmatprep.subr.bf16.mxu0 %v1217_v4  ;;  %v685_v0 = vld [vmem:[#allocation5 + $0x980] sm:$0xff]  ;;  %v420_v4 = vld [vmem:[#allocation5 + $0xa08] sm:$0xff]  ;;  %v1111_v7 = vpack.c.bf16 %v415_v19, %v413_v63  ;;  %v1257_v63 = vpack.c.bf16 %v708_v16, %v706_v56  ;;  %v707_v19 = vld [vmem:[#allocation5 + $0xb90] sm:$0xff] }
  0xba   :  { %v1239_v8 = vpack.c.bf16 %v687_v2, %v685_v0  ;;  %v1113_v9 = vpack.c.bf16 %v420_v4, %v418_v3  ;;  %v438_v0 = vld [vmem:[#allocation5 + $0xbb8] sm:$0xff]  ;;  %v710_v2 = vld [vmem:[#allocation5 + $0xbc8] sm:$0xff] }
  0xbb   :  { %1092 = vmatpush1.bf16.msra.mxu1 %v1091_v10  ;;  %v417_v10 = vld [vmem:[#allocation5 + $0x9d0] sm:$0xff]  ;;  %v712_v3 = vld [vmem:[#allocation5 + $0xbf8] sm:$0xff] }
  0xbc   :  { %1220 = vmatpush1.bf16.msra.mxu0 %v1219_v11  ;;  %1094 = vmatprep.subr.bf16.mxu1 %v1093_v12  ;;  %v419_v11 = vld [vmem:[#allocation5 + $0xa00] sm:$0xff] }
  0xbd   :  { %1222 = vmatprep.subr.bf16.mxu0 %v1221_v20  ;;  %v689_v12 = vld [vmem:[#allocation5 + $0x9e0] sm:$0xff]  ;;  %v424_v20 = vld [vmem:[#allocation5 + $0xa68] sm:$0xff]  ;;  %v1115_v23 = vpack.c.bf16 %v419_v11, %v417_v10  ;;  %v711_v11 = vld [vmem:[#allocation5 + $0xbf0] sm:$0xff] }
  0xbe   :  { %v1243_v24 = vpack.c.bf16 %v691_v14, %v689_v12  ;;  %v1117_v25 = vpack.c.bf16 %v424_v20, %v422_v15  ;;  %v709_v10 = vld [vmem:[#allocation5 + $0xbc0] sm:$0xff] }
  0xbf   :  { %1096 = vmatpush1.bf16.msra.mxu1 %v1095_v26  ;;  %v421_v26 = vld [vmem:[#allocation5 + $0xa30] sm:$0xff] }
  0xc0   :  { %1224 = vmatpush1.bf16.msra.mxu0 %v1223_v27  ;;  %1098 = vmatprep.subr.bf16.mxu1 %v1097_v28  ;;  %v423_v27 = vld [vmem:[#allocation5 + $0xa60] sm:$0xff] }
  0xc1   :  { %1226 = vmatprep.subr.bf16.mxu0 %v1225_v32  ;;  %v693_v28 = vld [vmem:[#allocation5 + $0xa40] sm:$0xff]  ;;  %v428_v32 = vld [vmem:[#allocation5 + $0xac8] sm:$0xff]  ;;  %v1119_v35 = vpack.c.bf16 %v423_v27, %v421_v26 }
  0xc2   :  { %v1247_v36 = vpack.c.bf16 %v695_v30, %v693_v28  ;;  %v1121_v37 = vpack.c.bf16 %v428_v32, %v426_v31 }
  0xc3   :  { %1100 = vmatpush1.bf16.msra.mxu1 %v1099_v38  ;;  %v425_v38 = vld [vmem:[#allocation5 + $0xa90] sm:$0xff] }
  0xc4   :  { %1228 = vmatpush1.bf16.msra.mxu0 %v1227_v39  ;;  %1102 = vmatprep.subr.bf16.mxu1 %v1101_v40  ;;  %v427_v39 = vld [vmem:[#allocation5 + $0xac0] sm:$0xff] }
  0xc5   :  { %1230 = vmatprep.subr.bf16.mxu0 %v1229_v44  ;;  %v697_v40 = vld [vmem:[#allocation5 + $0xaa0] sm:$0xff]  ;;  %v432_v44 = vld [vmem:[#allocation5 + $0xb28] sm:$0xff]  ;;  %v1123_v47 = vpack.c.bf16 %v427_v39, %v425_v38 }
  0xc6   :  { %v1251_v48 = vpack.c.bf16 %v699_v42, %v697_v40  ;;  %v1125_v49 = vpack.c.bf16 %v432_v44, %v430_v43 }
  0xc7   :  { %1104 = vmatpush1.bf16.msra.mxu1 %v1103_v50  ;;  %v429_v50 = vld [vmem:[#allocation5 + $0xaf0] sm:$0xff] }
  0xc8   :  { %1232 = vmatpush1.bf16.msra.mxu0 %v1231_v51  ;;  %1106 = vmatprep.subr.bf16.mxu1 %v1105_v52  ;;  %v431_v51 = vld [vmem:[#allocation5 + $0xb20] sm:$0xff] }
  0xc9   :  { %1234 = vmatprep.subr.bf16.mxu0 %v1233_v55  ;;  %v701_v52 = vld [vmem:[#allocation5 + $0xb00] sm:$0xff]  ;;  %v436_v55 = vld [vmem:[#allocation5 + $0xb88] sm:$0xff]  ;;  %v1127_v57 = vpack.c.bf16 %v431_v51, %v429_v50 }
  0xca   :  { %v1255_v58 = vpack.c.bf16 %v703_v53, %v701_v52  ;;  %v1129_v59 = vpack.c.bf16 %v436_v55, %v434_v54 }
  0xcb   :  { %1108 = vmatpush1.bf16.msra.mxu1 %v1107_v60  ;;  %v433_v60 = vld [vmem:[#allocation5 + $0xb50] sm:$0xff] }
  0xcc   :  { %1236 = vmatpush1.bf16.msra.mxu0 %v1235_v61  ;;  %1110 = vmatprep.subr.bf16.mxu1 %v1109_v62  ;;  %v435_v61 = vld [vmem:[#allocation5 + $0xb80] sm:$0xff] }
  0xcd   :  { %1238 = vmatprep.subr.bf16.mxu0 %v1237_v1  ;;  %v705_v62 = vld [vmem:[#allocation5 + $0xb60] sm:$0xff]  ;;  %v440_v1 = vld [vmem:[#allocation5 + $0xbe8] sm:$0xff]  ;;  %v1131_v4 = vpack.c.bf16 %v435_v61, %v433_v60 }
  0xce   :  { %v1259_v5 = vpack.c.bf16 %v707_v19, %v705_v62  ;;  %v1133_v6 = vpack.c.bf16 %v440_v1, %v438_v0 }
  0xcf   :  { %1112 = vmatpush1.bf16.msra.mxu1 %v1111_v7  ;;  %v437_v7 = vld [vmem:[#allocation5 + $0xbb0] sm:$0xff] }
  0xd0   :  { %1240 = vmatpush1.bf16.msra.mxu0 %v1239_v8  ;;  %1114 = vmatprep.subr.bf16.mxu1 %v1113_v9  ;;  %v439_v8 = vld [vmem:[#allocation5 + $0xbe0] sm:$0xff]  ;;  %v1261_v9 = vpack.c.bf16 %v712_v3, %v710_v2 }
  0xd1   :  { %1242 = vmatprep.subr.bf16.mxu0 %v1241_v13  ;;  %v1135_v12 = vpack.c.bf16 %v439_v8, %v437_v7  ;;  %v1263_v13 = vpack.c.bf16 %v711_v11, %v709_v10 }
  0xd3   :  { %1116 = vmatpush1.bf16.msra.mxu1 %v1115_v23 }
  0xd4   :  { %1244 = vmatpush1.bf16.msra.mxu0 %v1243_v24  ;;  %1118 = vmatprep.subr.bf16.mxu1 %v1117_v25 }
  0xd5   :  { %1246 = vmatprep.subr.bf16.mxu0 %v1245_v29 }
  0xd7   :  { %1120 = vmatpush1.bf16.msra.mxu1 %v1119_v35 }
  0xd8   :  { %1248 = vmatpush1.bf16.msra.mxu0 %v1247_v36  ;;  %1122 = vmatprep.subr.bf16.mxu1 %v1121_v37 }
  0xd9   :  { %1250 = vmatprep.subr.bf16.mxu0 %v1249_v41 }
  0xdb   :  { %1124 = vmatpush1.bf16.msra.mxu1 %v1123_v47 }
  0xdc   :  { %1252 = vmatpush1.bf16.msra.mxu0 %v1251_v48  ;;  %1126 = vmatprep.subr.bf16.mxu1 %v1125_v49 }
  0xdd   :  { %1254 = vmatprep.subr.bf16.mxu0 %v1253_v17 }
  0xdf   :  { %1128 = vmatpush1.bf16.msra.mxu1 %v1127_v57 }
  0xe0   :  { %1256 = vmatpush1.bf16.msra.mxu0 %v1255_v58  ;;  %1130 = vmatprep.subr.bf16.mxu1 %v1129_v59 }
  0xe1   :  { %1258 = vmatprep.subr.bf16.mxu0 %v1257_v63 }
  0xe3   :  { %1132 = vmatpush1.bf16.msra.mxu1 %v1131_v4 }
  0xe4   :  { %1260 = vmatpush1.bf16.msra.mxu0 %v1259_v5  ;;  %1134 = vmatprep.subr.bf16.mxu1 %v1133_v6 }
  0xe5   :  { %1262 = vmatprep.subr.bf16.mxu0 %v1261_v9 }
  0xe7   :  { %1136 = vmatpush1.bf16.msra.mxu1 %v1135_v12 }
  0xe8   :  { %1264 = vmatpush1.bf16.msra.mxu0 %v1263_v13 }
  0xea   :  { %577 = vmatmul.mubr.f32.vlgmr.msra.gmra.mrb[2].mxu1 %v1409_v18 }
  0xeb   :  { %849 = vmatmul.mubr.f32.vlgmr.msra.gmra.mrb[2].mxu0 %v1409_v18 }
 0x13d   :  { %v236_v14 = vpop.f32.mrb[0].mxu1 }
 0x13e   :  { %v307_v15 = vpop.f32.mrb[0].mxu0  ;;  %v238_v20 = vpop.f32.mrb[1].mxu1 }
 0x13f   :  { %v308_v21 = vadd.f32 %v307_v15, %v236_v14  ;;  %v309_v22 = vpop.f32.mrb[1].mxu0 }
 0x140   :  { %v310_v23 = vadd.f32 %v309_v22, %v238_v20 }
 0x142   :  { %v312_v24 = vmax.f32 %v308_v21, %v310_v23 }
 0x1bd   :  { %v578_v25 = vpop.f32.mrb[2].mxu1 }
 0x1be   :  { %v583_v26 = vmax.f32 %v312_v24, %v578_v25  ;;  %v850_v27 = vpop.f32.mrb[2].mxu0  ;;  %v580_v28 = vpop.f32.mrb[3].mxu1 }
 0x1bf   :  { %v852_v29 = vpop.f32.mrb[3].mxu0 }
 0x1c0   :  { %v584_v30 = vmax.f32 %v583_v26, %v580_v28 }
 0x1c2   :  { %v855_v31 = vmax.f32 %v584_v30, %v850_v27 }
 0x1c4   :  { %v856_v32 = vmax.f32 %v855_v31, %v852_v29 }
 0x1c6   :  { %v858_v33 = vmin.f32 %v856_v32, 0.0  ;;  %vm857_vm0 = vcmp.gt.f32.partialorder %v856_v32, 0.0 }
 0x1c8   :  { %v859_v34 = vmul.f32 1.442695, %v858_v33 }
 0x1ca   :  { %1276 = vpow2.f32 %v859_v34 }
 0x1d4   :  { %v1277_v18 = vpop.eup %1276 }
 0x1d5   :  { %v880_v35 = vadd.f32 -1.0, %v1277_v18 }
 0x1d7   :  { %v862_v36 = vsel %vm857_vm0, %v856_v32, %v880_v35 }
 0x1d8   :  { %863 = vst [vmem:[#allocation7] sm:$0xff] %v862_v36 }
 0x1d9   :  { %1333 = shalt.err (!%p1330_p6)
}
 0x1da   :  { %s1334_s10 = scalar_lea.hbm %s1435_s2, 128 }
 0x1db   :  { %p1335_p7 = scmp.ne.s32.totalorder %s1435_s2, %s1334_s10  ;;  %p1338_p8 = scmp.lt.u32.totalorder %s1334_s10, %s1435_s2 }
 0x1dd   :  { %p1340_p9 = pnand %p1338_p8, %p1335_p7 }
 0x1df   :  { %1343 = shalt.err (!%p1340_p9)
}
 0x1e0   :  { %873 = dma.vmem_to_hbm [thread:$0]  %s871_s6, 128, %s1435_s2, [#allocation4]  }
 0x1e1   :  { %1348 = dma.done.wait [#allocation4], 128  }
 0x1e2   :  { %1349 = vsyncadd [#allocation4], 4294967168 }
 0x1e3   :  { %877 = vsyncpa [#allocation3], 1 }
 0x1e4   :  { %878 = vsyncpa [#allocation6], 1 }
 0x1e5   :  { %879 = vsyncpa [#allocation4], 1 }

</bundles_post_ra>
